<compile_context>
chip_gen: v5e
topology: v5e:2x2
jax: 0.10.0
libtpu: 0.0.40
codegen_flags: <defaults>
</compile_context>

<pallas_src>
import functools

import jax
import jax.numpy as jnp
from jax.experimental import pallas as pl
from jax.experimental.pallas import tpu as pltpu


# ----------------------------------------------------------------------------
# Pallas kernel
# ----------------------------------------------------------------------------
def _make_lstm_kernel(num_layers: int, seq_len: int, hidden_dim: int, batch_pad: int):
    H = hidden_dim
    T = seq_len
    Bp = batch_pad
    G = 4 * H

    def kernel(x_ref, w_ref, out_ref, hbuf_ref):
        # x_ref   : (T*Bp, H)  bf16   time-major layer-0 input (features zero-padded to H)
        # w_ref   : (L+1, 2H+1, 4H) bf16
        #           layers 0..L-1: [w_ih (H rows, zero-padded) ; w_hh ; bias],
        #             gate column order [i | f | o | g]
        #           layer L (head): rows [:H] = w_out, row [H] = b_out (cols padded to 4H)
        # out_ref : (Bp, 4H)   f32
        # hbuf_ref: (T*Bp, H)  bf16   VMEM scratch: hidden sequence -> next layer's input
        h_last = None
        for l in range(num_layers):
            # Ref slices: only the rows needed for this layer are loaded.
            w_ih = w_ref[l, :H, :]                                   # (H, 4H) bf16
            w_hh = w_ref[l, H:2 * H, :]                              # (H, 4H) bf16
            bias = w_ref[l, 2 * H:2 * H + 1, :].astype(jnp.float32)  # (1, 4H) f32

            # Batched input projection for ALL timesteps (off the recurrent
            # critical path); bf16 x bf16 -> f32 accumulate, bias folded in.
            layer_in = x_ref[...] if l == 0 else hbuf_ref[...]       # (T*Bp, H) bf16
            proj = jnp.dot(layer_in, w_ih,
                           preferred_element_type=jnp.float32) + bias  # (T*Bp, 4H) f32

            h = jnp.zeros((Bp, H), jnp.float32)
            c = jnp.zeros((Bp, H), jnp.float32)
            for t in range(T):
                gates = proj[t * Bp:(t + 1) * Bp, :] + jnp.dot(
                    h.astype(jnp.bfloat16), w_hh,
                    preferred_element_type=jnp.float32)              # (Bp, 4H) f32
                # Nonlinearities over the full gates tile; slice the results.
                sig = jax.nn.sigmoid(gates)                          # i|f|o (and junk on g)
                tnh = jnp.tanh(gates)                                # g     (and junk on i|f|o)
                i_g = sig[:, 0:H]
                f_g = sig[:, H:2 * H]
                o_g = sig[:, 2 * H:3 * H]
                g_g = tnh[:, 3 * H:4 * H]
                c = f_g * c + i_g * g_g
                h = o_g * jnp.tanh(c)
                if l + 1 < num_layers:
                    # Sublane-aligned (Bp=8k rows) store; frees h immediately.
                    hbuf_ref[pl.ds(t * Bp, Bp), :] = h.astype(jnp.bfloat16)
            h_last = h

        # Linear head on the last-time-step hidden state of the top layer
        # (head slab folded in as "layer" L).
        w_out = w_ref[num_layers, :H, :]                             # (H, 4H) bf16
        b_out = w_ref[num_layers, H:H + 1, :].astype(jnp.float32)    # (1, 4H) f32
        out_ref[...] = jnp.dot(h_last.astype(jnp.bfloat16), w_out,
                               preferred_element_type=jnp.float32) + b_out

    return kernel


# ----------------------------------------------------------------------------
# Wrapper: packs parameters / input, calls the kernel, un-pads the result.
# ----------------------------------------------------------------------------
def lstm_forecaster_forward(x, params, *, num_layers, hidden_dim, output_dim):
    """x: (B, T, D_in) float32.  Returns (B, output_dim) float32."""
    B, T, D_in = x.shape
    H = hidden_dim
    G = 4 * H
    assert D_in <= H, "parameter packing assumes input_dim <= hidden_dim"
    assert output_dim <= G, "head packing assumes output_dim <= 4*hidden_dim"
    Bp = ((B + 7) // 8) * 8  # pad batch to sublane multiple (independent rows)

    # ---- x: pad batch -> Bp and features -> H, time-major, flatten, cast to bf16
    x_pad = jnp.zeros((Bp, T, H), jnp.float32)
    x_pad = x_pad.at[:B, :, :D_in].set(x.astype(jnp.float32))
    x_tm = x_pad.transpose(1, 0, 2).reshape(T * Bp, H).astype(jnp.bfloat16)

    # ---- gate column permutation: PyTorch [i|f|g|o] -> kernel [i|f|o|g]
    def reorder(w):
        return jnp.concatenate(
            [w[..., :2 * H], w[..., 3 * H:4 * H], w[..., 2 * H:3 * H]], axis=-1)

    # ---- per-layer slabs [w_ih ; w_hh ; bias] + head slab, one bf16 operand
    slabs = []
    for l in range(num_layers):
        w_ih = params[f"w_ih_{l}"].astype(jnp.float32)               # (in_dim, 4H)
        in_dim = w_ih.shape[0]
        w_ih_pad = jnp.zeros((H, G), jnp.float32).at[:in_dim, :].set(w_ih)
        w_hh = params[f"w_hh_{l}"].astype(jnp.float32)               # (H, 4H)
        bias = params[f"b_{l}"].astype(jnp.float32).reshape(1, G)
        slabs.append(jnp.concatenate(
            [reorder(w_ih_pad), reorder(w_hh), reorder(bias)], axis=0))

    w_out = params["w_out"].astype(jnp.float32)                      # (H, output_dim)
    b_out = params["b_out"].astype(jnp.float32).reshape(-1)          # (output_dim,)
    head = jnp.zeros((2 * H + 1, G), jnp.float32)
    head = head.at[:H, :output_dim].set(w_out)
    head = head.at[H, :output_dim].set(b_out)
    slabs.append(head)
    w_all = jnp.stack(slabs, axis=0).astype(jnp.bfloat16)            # (L+1, 2H+1, 4H)

    kernel = _make_lstm_kernel(num_layers, T, H, Bp)
    vmem = pl.BlockSpec(memory_space=pltpu.MemorySpace.VMEM)
    out_padded = pl.pallas_call(
        kernel,
        out_shape=jax.ShapeDtypeStruct((Bp, G), jnp.float32),
        in_specs=[vmem, vmem],
        out_specs=vmem,
        scratch_shapes=[pltpu.VMEM((T * Bp, H), jnp.bfloat16)],
    )(x_tm, w_all)
    return out_padded[:B, :output_dim]


# ----------------------------------------------------------------------------
# Deterministic parameter init (nn.LSTM / nn.Linear shapes, pre-transposed to
# (in_features, out_features); gate block order = PyTorch's [i | f | g | o]).
# ----------------------------------------------------------------------------
def init_params(key, input_dim, hidden_dim, num_layers, output_dim):
    params = {}
    bound = 1.0 / jnp.sqrt(jnp.float32(hidden_dim))
    for l in range(num_layers):
        in_dim = input_dim if l == 0 else hidden_dim
        key, k1, k2, k3, k4 = jax.random.split(key, 5)
        params[f"w_ih_{l}"] = jax.random.uniform(
            k1, (in_dim, 4 * hidden_dim), jnp.float32, -bound, bound)
        params[f"w_hh_{l}"] = jax.random.uniform(
            k2, (hidden_dim, 4 * hidden_dim), jnp.float32, -bound, bound)
        b_ih = jax.random.uniform(k3, (4 * hidden_dim,), jnp.float32, -bound, bound)
        b_hh = jax.random.uniform(k4, (4 * hidden_dim,), jnp.float32, -bound, bound)
        params[f"b_{l}"] = (b_ih + b_hh).reshape(1, 4 * hidden_dim)
    key, k1, k2 = jax.random.split(key, 3)
    lin_bound = 1.0 / jnp.sqrt(jnp.float32(hidden_dim))
    params["w_out"] = jax.random.uniform(
        k1, (hidden_dim, output_dim), jnp.float32, -lin_bound, lin_bound)
    params["b_out"] = jax.random.uniform(
        k2, (1, output_dim), jnp.float32, -lin_bound, lin_bound)
    return params


# Pure-JAX f32 reference (PyTorch gate order / math) for a sanity check.
def reference_forward(x, params, *, num_layers, hidden_dim, output_dim):
    B, T, _ = x.shape
    H = hidden_dim
    h = [jnp.zeros((B, H), jnp.float32) for _ in range(num_layers)]
    c = [jnp.zeros((B, H), jnp.float32) for _ in range(num_layers)]
    for t in range(T):
        inp = x[:, t, :]
        for l in range(num_layers):
            gates = inp @ params[f"w_ih_{l}"] + h[l] @ params[f"w_hh_{l}"] + params[f"b_{l}"]
            i_g = jax.nn.sigmoid(gates[:, 0 * H:1 * H])
            f_g = jax.nn.sigmoid(gates[:, 1 * H:2 * H])
            g_g = jnp.tanh(gates[:, 2 * H:3 * H])
            o_g = jax.nn.sigmoid(gates[:, 3 * H:4 * H])
            c[l] = f_g * c[l] + i_g * g_g
            h[l] = o_g * jnp.tanh(c[l])
            inp = h[l]
    return h[-1] @ params["w_out"] + params["b_out"]


if __name__ == "__main__":
    # Small shapes consistent with the module's forward:
    #   x: (batch=2, seq=8, input_dim=4), hidden=32, layers=2, output=1
    B, T, D_IN, H, L, D_OUT = 2, 8, 4, 32, 2, 1

    key = jax.random.PRNGKey(0)
    key, xk = jax.random.split(key)
    x = jax.random.normal(xk, (B, T, D_IN), jnp.float32)

    params = init_params(key, D_IN, H, L, D_OUT)

    fwd = functools.partial(
        lstm_forecaster_forward, num_layers=L, hidden_dim=H, output_dim=D_OUT)

    out = jax.block_until_ready(fwd(x, params))
    assert out.shape == (B, D_OUT), out.shape

    ref = reference_forward(x, params, num_layers=L, hidden_dim=H, output_dim=D_OUT)
    # bf16 MXU operands vs. f32 reference -> loosened tolerance (expected precision loss).
    assert jnp.allclose(out, ref, atol=2e-2, rtol=2e-2), (out, ref)

    print("KERNEL_OK")
</pallas_src>

<mosaic_0001>
module attributes {stable_mosaic.version = 11 : i64} {
  func.func @kernel(%arg0: memref<64x32xbf16, #tpu.memory_space<vmem>>, %arg1: memref<3x65x128xbf16, #tpu.memory_space<vmem>>, %arg2: memref<8x128xf32, #tpu.memory_space<vmem>>, %arg3: memref<64x32xbf16, #tpu.memory_space<vmem>>) attributes {dimension_semantics = [], scalar_prefetch = 0 : i64, scratch_operands = 1 : i64, tpu.core_type = #tpu.core_type<tc>} {
    %c0 = arith.constant 0 : index
    %c0_0 = arith.constant 0 : index
    %c0_1 = arith.constant 0 : index
    %0 = vector.load %arg1[%c0, %c0_0, %c0_1] : memref<3x65x128xbf16, #tpu.memory_space<vmem>>, vector<1x32x128xbf16>
    %1 = vector.shape_cast %0 : vector<1x32x128xbf16> to vector<32x128xbf16>
    %c0_2 = arith.constant 0 : index
    %c32 = arith.constant 32 : index
    %c0_3 = arith.constant 0 : index
    %2 = vector.load %arg1[%c0_2, %c32, %c0_3] : memref<3x65x128xbf16, #tpu.memory_space<vmem>>, vector<1x32x128xbf16>
    %3 = vector.shape_cast %2 : vector<1x32x128xbf16> to vector<32x128xbf16>
    %c0_4 = arith.constant 0 : index
    %c64 = arith.constant 64 : index
    %c0_5 = arith.constant 0 : index
    %4 = vector.load %arg1[%c0_4, %c64, %c0_5] : memref<3x65x128xbf16, #tpu.memory_space<vmem>>, vector<1x1x128xbf16>
    %5 = vector.shape_cast %4 : vector<1x1x128xbf16> to vector<1x128xbf16>
    %6 = arith.extf %5 : vector<1x128xbf16> to vector<1x128xf32>
    %c0_6 = arith.constant 0 : index
    %c0_7 = arith.constant 0 : index
    %7 = vector.load %arg0[%c0_6, %c0_7] : memref<64x32xbf16, #tpu.memory_space<vmem>>, vector<64x32xbf16>
    %cst = arith.constant dense<0.000000e+00> : vector<64x128xf32>
    %8 = tpu.matmul %7, %1, %cst {dimension_numbers = #tpu.dot_dimension_numbers<[1], [0], [0], [1], [0, 0, 1, 1], [], []>} : vector<64x32xbf16>, vector<32x128xbf16>, vector<64x128xf32> -> vector<64x128xf32>
    %9 = vector.broadcast %6 : vector<1x128xf32> to vector<64x128xf32>
    %10 = arith.addf %8, %9 : vector<64x128xf32>
    %cst_8 = arith.constant 0.000000e+00 : f32
    %11 = vector.broadcast %cst_8 : f32 to vector<8x32xf32>
    %cst_9 = arith.constant 0.000000e+00 : f32
    %12 = vector.broadcast %cst_9 : f32 to vector<8x32xf32>
    %13 = vector.extract_strided_slice %10 {offsets = [0, 0], sizes = [8, 128], strides = [1, 1]} : vector<64x128xf32> to vector<8x128xf32>
    %14 = arith.truncf %11 : vector<8x32xf32> to vector<8x32xbf16>
    %cst_10 = arith.constant dense<0.000000e+00> : vector<8x128xf32>
    %15 = tpu.matmul %14, %3, %cst_10 {dimension_numbers = #tpu.dot_dimension_numbers<[1], [0], [0], [1], [0, 0, 1, 1], [], []>} : vector<8x32xbf16>, vector<32x128xbf16>, vector<8x128xf32> -> vector<8x128xf32>
    %16 = arith.addf %13, %15 : vector<8x128xf32>
    %17 = arith.negf %16 : vector<8x128xf32>
    %18 = math.exp %17 : vector<8x128xf32>
    %cst_11 = arith.constant 1.000000e+00 : f32
    %19 = vector.broadcast %cst_11 : f32 to vector<8x128xf32>
    %20 = arith.addf %19, %18 : vector<8x128xf32>
    %21 = arith.divf %19, %20 : vector<8x128xf32>
    %22 = math.tanh %16 : vector<8x128xf32>
    %23 = vector.extract_strided_slice %21 {offsets = [0, 0], sizes = [8, 32], strides = [1, 1]} : vector<8x128xf32> to vector<8x32xf32>
    %24 = vector.extract_strided_slice %21 {offsets = [0, 32], sizes = [8, 32], strides = [1, 1]} : vector<8x128xf32> to vector<8x32xf32>
    %25 = vector.extract_strided_slice %21 {offsets = [0, 64], sizes = [8, 32], strides = [1, 1]} : vector<8x128xf32> to vector<8x32xf32>
    %26 = vector.extract_strided_slice %22 {offsets = [0, 96], sizes = [8, 32], strides = [1, 1]} : vector<8x128xf32> to vector<8x32xf32>
    %27 = arith.mulf %24, %12 : vector<8x32xf32>
    %28 = arith.mulf %23, %26 : vector<8x32xf32>
    %29 = arith.addf %27, %28 : vector<8x32xf32>
    %30 = math.tanh %29 : vector<8x32xf32>
    %31 = arith.mulf %25, %30 : vector<8x32xf32>
    %32 = arith.truncf %31 : vector<8x32xf32> to vector<8x32xbf16>
    %c0_12 = arith.constant 0 : index
    %c0_13 = arith.constant 0 : index
    %33 = vector.load %arg3[%c0_12, %c0_13] : memref<64x32xbf16, #tpu.memory_space<vmem>>, vector<8x32xbf16>
    tpu.vector_store %arg3[%c0_12, %c0_13], %32 {strides = array<i32>} : memref<64x32xbf16, #tpu.memory_space<vmem>>, vector<8x32xbf16>,
    %34 = vector.extract_strided_slice %10 {offsets = [8, 0], sizes = [8, 128], strides = [1, 1]} : vector<64x128xf32> to vector<8x128xf32>
    %35 = arith.truncf %31 : vector<8x32xf32> to vector<8x32xbf16>
    %cst_14 = arith.constant dense<0.000000e+00> : vector<8x128xf32>
    %36 = tpu.matmul %35, %3, %cst_14 {dimension_numbers = #tpu.dot_dimension_numbers<[1], [0], [0], [1], [0, 0, 1, 1], [], []>} : vector<8x32xbf16>, vector<32x128xbf16>, vector<8x128xf32> -> vector<8x128xf32>
    %37 = arith.addf %34, %36 : vector<8x128xf32>
    %38 = arith.negf %37 : vector<8x128xf32>
    %39 = math.exp %38 : vector<8x128xf32>
    %cst_15 = arith.constant 1.000000e+00 : f32
    %40 = vector.broadcast %cst_15 : f32 to vector<8x128xf32>
    %41 = arith.addf %40, %39 : vector<8x128xf32>
    %42 = arith.divf %40, %41 : vector<8x128xf32>
    %43 = math.tanh %37 : vector<8x128xf32>
    %44 = vector.extract_strided_slice %42 {offsets = [0, 0], sizes = [8, 32], strides = [1, 1]} : vector<8x128xf32> to vector<8x32xf32>
    %45 = vector.extract_strided_slice %42 {offsets = [0, 32], sizes = [8, 32], strides = [1, 1]} : vector<8x128xf32> to vector<8x32xf32>
    %46 = vector.extract_strided_slice %42 {offsets = [0, 64], sizes = [8, 32], strides = [1, 1]} : vector<8x128xf32> to vector<8x32xf32>
    %47 = vector.extract_strided_slice %43 {offsets = [0, 96], sizes = [8, 32], strides = [1, 1]} : vector<8x128xf32> to vector<8x32xf32>
    %48 = arith.mulf %45, %29 : vector<8x32xf32>
    %49 = arith.mulf %44, %47 : vector<8x32xf32>
    %50 = arith.addf %48, %49 : vector<8x32xf32>
    %51 = math.tanh %50 : vector<8x32xf32>
    %52 = arith.mulf %46, %51 : vector<8x32xf32>
    %53 = arith.truncf %52 : vector<8x32xf32> to vector<8x32xbf16>
    %c8 = arith.constant 8 : index
    %c0_16 = arith.constant 0 : index
    %54 = vector.load %arg3[%c8, %c0_16] : memref<64x32xbf16, #tpu.memory_space<vmem>>, vector<8x32xbf16>
    tpu.vector_store %arg3[%c8, %c0_16], %53 {strides = array<i32>} : memref<64x32xbf16, #tpu.memory_space<vmem>>, vector<8x32xbf16>,
    %55 = vector.extract_strided_slice %10 {offsets = [16, 0], sizes = [8, 128], strides = [1, 1]} : vector<64x128xf32> to vector<8x128xf32>
    %56 = arith.truncf %52 : vector<8x32xf32> to vector<8x32xbf16>
    %cst_17 = arith.constant dense<0.000000e+00> : vector<8x128xf32>
    %57 = tpu.matmul %56, %3, %cst_17 {dimension_numbers = #tpu.dot_dimension_numbers<[1], [0], [0], [1], [0, 0, 1, 1], [], []>} : vector<8x32xbf16>, vector<32x128xbf16>, vector<8x128xf32> -> vector<8x128xf32>
    %58 = arith.addf %55, %57 : vector<8x128xf32>
    %59 = arith.negf %58 : vector<8x128xf32>
    %60 = math.exp %59 : vector<8x128xf32>
    %cst_18 = arith.constant 1.000000e+00 : f32
    %61 = vector.broadcast %cst_18 : f32 to vector<8x128xf32>
    %62 = arith.addf %61, %60 : vector<8x128xf32>
    %63 = arith.divf %61, %62 : vector<8x128xf32>
    %64 = math.tanh %58 : vector<8x128xf32>
    %65 = vector.extract_strided_slice %63 {offsets = [0, 0], sizes = [8, 32], strides = [1, 1]} : vector<8x128xf32> to vector<8x32xf32>
    %66 = vector.extract_strided_slice %63 {offsets = [0, 32], sizes = [8, 32], strides = [1, 1]} : vector<8x128xf32> to vector<8x32xf32>
    %67 = vector.extract_strided_slice %63 {offsets = [0, 64], sizes = [8, 32], strides = [1, 1]} : vector<8x128xf32> to vector<8x32xf32>
    %68 = vector.extract_strided_slice %64 {offsets = [0, 96], sizes = [8, 32], strides = [1, 1]} : vector<8x128xf32> to vector<8x32xf32>
    %69 = arith.mulf %66, %50 : vector<8x32xf32>
    %70 = arith.mulf %65, %68 : vector<8x32xf32>
    %71 = arith.addf %69, %70 : vector<8x32xf32>
    %72 = math.tanh %71 : vector<8x32xf32>
    %73 = arith.mulf %67, %72 : vector<8x32xf32>
    %74 = arith.truncf %73 : vector<8x32xf32> to vector<8x32xbf16>
    %c16 = arith.constant 16 : index
    %c0_19 = arith.constant 0 : index
    %75 = vector.load %arg3[%c16, %c0_19] : memref<64x32xbf16, #tpu.memory_space<vmem>>, vector<8x32xbf16>
    tpu.vector_store %arg3[%c16, %c0_19], %74 {strides = array<i32>} : memref<64x32xbf16, #tpu.memory_space<vmem>>, vector<8x32xbf16>,
    %76 = vector.extract_strided_slice %10 {offsets = [24, 0], sizes = [8, 128], strides = [1, 1]} : vector<64x128xf32> to vector<8x128xf32>
    %77 = arith.truncf %73 : vector<8x32xf32> to vector<8x32xbf16>
    %cst_20 = arith.constant dense<0.000000e+00> : vector<8x128xf32>
    %78 = tpu.matmul %77, %3, %cst_20 {dimension_numbers = #tpu.dot_dimension_numbers<[1], [0], [0], [1], [0, 0, 1, 1], [], []>} : vector<8x32xbf16>, vector<32x128xbf16>, vector<8x128xf32> -> vector<8x128xf32>
    %79 = arith.addf %76, %78 : vector<8x128xf32>
    %80 = arith.negf %79 : vector<8x128xf32>
    %81 = math.exp %80 : vector<8x128xf32>
    %cst_21 = arith.constant 1.000000e+00 : f32
    %82 = vector.broadcast %cst_21 : f32 to vector<8x128xf32>
    %83 = arith.addf %82, %81 : vector<8x128xf32>
    %84 = arith.divf %82, %83 : vector<8x128xf32>
    %85 = math.tanh %79 : vector<8x128xf32>
    %86 = vector.extract_strided_slice %84 {offsets = [0, 0], sizes = [8, 32], strides = [1, 1]} : vector<8x128xf32> to vector<8x32xf32>
    %87 = vector.extract_strided_slice %84 {offsets = [0, 32], sizes = [8, 32], strides = [1, 1]} : vector<8x128xf32> to vector<8x32xf32>
    %88 = vector.extract_strided_slice %84 {offsets = [0, 64], sizes = [8, 32], strides = [1, 1]} : vector<8x128xf32> to vector<8x32xf32>
    %89 = vector.extract_strided_slice %85 {offsets = [0, 96], sizes = [8, 32], strides = [1, 1]} : vector<8x128xf32> to vector<8x32xf32>
    %90 = arith.mulf %87, %71 : vector<8x32xf32>
    %91 = arith.mulf %86, %89 : vector<8x32xf32>
    %92 = arith.addf %90, %91 : vector<8x32xf32>
    %93 = math.tanh %92 : vector<8x32xf32>
    %94 = arith.mulf %88, %93 : vector<8x32xf32>
    %95 = arith.truncf %94 : vector<8x32xf32> to vector<8x32xbf16>
    %c24 = arith.constant 24 : index
    %c0_22 = arith.constant 0 : index
    %96 = vector.load %arg3[%c24, %c0_22] : memref<64x32xbf16, #tpu.memory_space<vmem>>, vector<8x32xbf16>
    tpu.vector_store %arg3[%c24, %c0_22], %95 {strides = array<i32>} : memref<64x32xbf16, #tpu.memory_space<vmem>>, vector<8x32xbf16>,
    %97 = vector.extract_strided_slice %10 {offsets = [32, 0], sizes = [8, 128], strides = [1, 1]} : vector<64x128xf32> to vector<8x128xf32>
    %98 = arith.truncf %94 : vector<8x32xf32> to vector<8x32xbf16>
    %cst_23 = arith.constant dense<0.000000e+00> : vector<8x128xf32>
    %99 = tpu.matmul %98, %3, %cst_23 {dimension_numbers = #tpu.dot_dimension_numbers<[1], [0], [0], [1], [0, 0, 1, 1], [], []>} : vector<8x32xbf16>, vector<32x128xbf16>, vector<8x128xf32> -> vector<8x128xf32>
    %100 = arith.addf %97, %99 : vector<8x128xf32>
    %101 = arith.negf %100 : vector<8x128xf32>
    %102 = math.exp %101 : vector<8x128xf32>
    %cst_24 = arith.constant 1.000000e+00 : f32
    %103 = vector.broadcast %cst_24 : f32 to vector<8x128xf32>
    %104 = arith.addf %103, %102 : vector<8x128xf32>
    %105 = arith.divf %103, %104 : vector<8x128xf32>
    %106 = math.tanh %100 : vector<8x128xf32>
    %107 = vector.extract_strided_slice %105 {offsets = [0, 0], sizes = [8, 32], strides = [1, 1]} : vector<8x128xf32> to vector<8x32xf32>
    %108 = vector.extract_strided_slice %105 {offsets = [0, 32], sizes = [8, 32], strides = [1, 1]} : vector<8x128xf32> to vector<8x32xf32>
    %109 = vector.extract_strided_slice %105 {offsets = [0, 64], sizes = [8, 32], strides = [1, 1]} : vector<8x128xf32> to vector<8x32xf32>
    %110 = vector.extract_strided_slice %106 {offsets = [0, 96], sizes = [8, 32], strides = [1, 1]} : vector<8x128xf32> to vector<8x32xf32>
    %111 = arith.mulf %108, %92 : vector<8x32xf32>
    %112 = arith.mulf %107, %110 : vector<8x32xf32>
    %113 = arith.addf %111, %112 : vector<8x32xf32>
    %114 = math.tanh %113 : vector<8x32xf32>
    %115 = arith.mulf %109, %114 : vector<8x32xf32>
    %116 = arith.truncf %115 : vector<8x32xf32> to vector<8x32xbf16>
    %c32_25 = arith.constant 32 : index
    %c0_26 = arith.constant 0 : index
    %117 = vector.load %arg3[%c32_25, %c0_26] : memref<64x32xbf16, #tpu.memory_space<vmem>>, vector<8x32xbf16>
    tpu.vector_store %arg3[%c32_25, %c0_26], %116 {strides = array<i32>} : memref<64x32xbf16, #tpu.memory_space<vmem>>, vector<8x32xbf16>,
    %118 = vector.extract_strided_slice %10 {offsets = [40, 0], sizes = [8, 128], strides = [1, 1]} : vector<64x128xf32> to vector<8x128xf32>
    %119 = arith.truncf %115 : vector<8x32xf32> to vector<8x32xbf16>
    %cst_27 = arith.constant dense<0.000000e+00> : vector<8x128xf32>
    %120 = tpu.matmul %119, %3, %cst_27 {dimension_numbers = #tpu.dot_dimension_numbers<[1], [0], [0], [1], [0, 0, 1, 1], [], []>} : vector<8x32xbf16>, vector<32x128xbf16>, vector<8x128xf32> -> vector<8x128xf32>
    %121 = arith.addf %118, %120 : vector<8x128xf32>
    %122 = arith.negf %121 : vector<8x128xf32>
    %123 = math.exp %122 : vector<8x128xf32>
    %cst_28 = arith.constant 1.000000e+00 : f32
    %124 = vector.broadcast %cst_28 : f32 to vector<8x128xf32>
    %125 = arith.addf %124, %123 : vector<8x128xf32>
    %126 = arith.divf %124, %125 : vector<8x128xf32>
    %127 = math.tanh %121 : vector<8x128xf32>
    %128 = vector.extract_strided_slice %126 {offsets = [0, 0], sizes = [8, 32], strides = [1, 1]} : vector<8x128xf32> to vector<8x32xf32>
    %129 = vector.extract_strided_slice %126 {offsets = [0, 32], sizes = [8, 32], strides = [1, 1]} : vector<8x128xf32> to vector<8x32xf32>
    %130 = vector.extract_strided_slice %126 {offsets = [0, 64], sizes = [8, 32], strides = [1, 1]} : vector<8x128xf32> to vector<8x32xf32>
    %131 = vector.extract_strided_slice %127 {offsets = [0, 96], sizes = [8, 32], strides = [1, 1]} : vector<8x128xf32> to vector<8x32xf32>
    %132 = arith.mulf %129, %113 : vector<8x32xf32>
    %133 = arith.mulf %128, %131 : vector<8x32xf32>
    %134 = arith.addf %132, %133 : vector<8x32xf32>
    %135 = math.tanh %134 : vector<8x32xf32>
    %136 = arith.mulf %130, %135 : vector<8x32xf32>
    %137 = arith.truncf %136 : vector<8x32xf32> to vector<8x32xbf16>
    %c40 = arith.constant 40 : index
    %c0_29 = arith.constant 0 : index
    %138 = vector.load %arg3[%c40, %c0_29] : memref<64x32xbf16, #tpu.memory_space<vmem>>, vector<8x32xbf16>
    tpu.vector_store %arg3[%c40, %c0_29], %137 {strides = array<i32>} : memref<64x32xbf16, #tpu.memory_space<vmem>>, vector<8x32xbf16>,
    %139 = vector.extract_strided_slice %10 {offsets = [48, 0], sizes = [8, 128], strides = [1, 1]} : vector<64x128xf32> to vector<8x128xf32>
    %140 = arith.truncf %136 : vector<8x32xf32> to vector<8x32xbf16>
    %cst_30 = arith.constant dense<0.000000e+00> : vector<8x128xf32>
    %141 = tpu.matmul %140, %3, %cst_30 {dimension_numbers = #tpu.dot_dimension_numbers<[1], [0], [0], [1], [0, 0, 1, 1], [], []>} : vector<8x32xbf16>, vector<32x128xbf16>, vector<8x128xf32> -> vector<8x128xf32>
    %142 = arith.addf %139, %141 : vector<8x128xf32>
    %143 = arith.negf %142 : vector<8x128xf32>
    %144 = math.exp %143 : vector<8x128xf32>
    %cst_31 = arith.constant 1.000000e+00 : f32
    %145 = vector.broadcast %cst_31 : f32 to vector<8x128xf32>
    %146 = arith.addf %145, %144 : vector<8x128xf32>
    %147 = arith.divf %145, %146 : vector<8x128xf32>
    %148 = math.tanh %142 : vector<8x128xf32>
    %149 = vector.extract_strided_slice %147 {offsets = [0, 0], sizes = [8, 32], strides = [1, 1]} : vector<8x128xf32> to vector<8x32xf32>
    %150 = vector.extract_strided_slice %147 {offsets = [0, 32], sizes = [8, 32], strides = [1, 1]} : vector<8x128xf32> to vector<8x32xf32>
    %151 = vector.extract_strided_slice %147 {offsets = [0, 64], sizes = [8, 32], strides = [1, 1]} : vector<8x128xf32> to vector<8x32xf32>
    %152 = vector.extract_strided_slice %148 {offsets = [0, 96], sizes = [8, 32], strides = [1, 1]} : vector<8x128xf32> to vector<8x32xf32>
    %153 = arith.mulf %150, %134 : vector<8x32xf32>
    %154 = arith.mulf %149, %152 : vector<8x32xf32>
    %155 = arith.addf %153, %154 : vector<8x32xf32>
    %156 = math.tanh %155 : vector<8x32xf32>
    %157 = arith.mulf %151, %156 : vector<8x32xf32>
    %158 = arith.truncf %157 : vector<8x32xf32> to vector<8x32xbf16>
    %c48 = arith.constant 48 : index
    %c0_32 = arith.constant 0 : index
    %159 = vector.load %arg3[%c48, %c0_32] : memref<64x32xbf16, #tpu.memory_space<vmem>>, vector<8x32xbf16>
    tpu.vector_store %arg3[%c48, %c0_32], %158 {strides = array<i32>} : memref<64x32xbf16, #tpu.memory_space<vmem>>, vector<8x32xbf16>,
    %160 = vector.extract_strided_slice %10 {offsets = [56, 0], sizes = [8, 128], strides = [1, 1]} : vector<64x128xf32> to vector<8x128xf32>
    %161 = arith.truncf %157 : vector<8x32xf32> to vector<8x32xbf16>
    %cst_33 = arith.constant dense<0.000000e+00> : vector<8x128xf32>
    %162 = tpu.matmul %161, %3, %cst_33 {dimension_numbers = #tpu.dot_dimension_numbers<[1], [0], [0], [1], [0, 0, 1, 1], [], []>} : vector<8x32xbf16>, vector<32x128xbf16>, vector<8x128xf32> -> vector<8x128xf32>
    %163 = arith.addf %160, %162 : vector<8x128xf32>
    %164 = arith.negf %163 : vector<8x128xf32>
    %165 = math.exp %164 : vector<8x128xf32>
    %cst_34 = arith.constant 1.000000e+00 : f32
    %166 = vector.broadcast %cst_34 : f32 to vector<8x128xf32>
    %167 = arith.addf %166, %165 : vector<8x128xf32>
    %168 = arith.divf %166, %167 : vector<8x128xf32>
    %169 = math.tanh %163 : vector<8x128xf32>
    %170 = vector.extract_strided_slice %168 {offsets = [0, 0], sizes = [8, 32], strides = [1, 1]} : vector<8x128xf32> to vector<8x32xf32>
    %171 = vector.extract_strided_slice %168 {offsets = [0, 32], sizes = [8, 32], strides = [1, 1]} : vector<8x128xf32> to vector<8x32xf32>
    %172 = vector.extract_strided_slice %168 {offsets = [0, 64], sizes = [8, 32], strides = [1, 1]} : vector<8x128xf32> to vector<8x32xf32>
    %173 = vector.extract_strided_slice %169 {offsets = [0, 96], sizes = [8, 32], strides = [1, 1]} : vector<8x128xf32> to vector<8x32xf32>
    %174 = arith.mulf %171, %155 : vector<8x32xf32>
    %175 = arith.mulf %170, %173 : vector<8x32xf32>
    %176 = arith.addf %174, %175 : vector<8x32xf32>
    %177 = math.tanh %176 : vector<8x32xf32>
    %178 = arith.mulf %172, %177 : vector<8x32xf32>
    %179 = arith.truncf %178 : vector<8x32xf32> to vector<8x32xbf16>
    %c56 = arith.constant 56 : index
    %c0_35 = arith.constant 0 : index
    %180 = vector.load %arg3[%c56, %c0_35] : memref<64x32xbf16, #tpu.memory_space<vmem>>, vector<8x32xbf16>
    tpu.vector_store %arg3[%c56, %c0_35], %179 {strides = array<i32>} : memref<64x32xbf16, #tpu.memory_space<vmem>>, vector<8x32xbf16>,
    %c1 = arith.constant 1 : index
    %c0_36 = arith.constant 0 : index
    %c0_37 = arith.constant 0 : index
    %181 = vector.load %arg1[%c1, %c0_36, %c0_37] : memref<3x65x128xbf16, #tpu.memory_space<vmem>>, vector<1x32x128xbf16>
    %182 = vector.shape_cast %181 : vector<1x32x128xbf16> to vector<32x128xbf16>
    %c1_38 = arith.constant 1 : index
    %c32_39 = arith.constant 32 : index
    %c0_40 = arith.constant 0 : index
    %183 = vector.load %arg1[%c1_38, %c32_39, %c0_40] : memref<3x65x128xbf16, #tpu.memory_space<vmem>>, vector<1x32x128xbf16>
    %184 = vector.shape_cast %183 : vector<1x32x128xbf16> to vector<32x128xbf16>
    %c1_41 = arith.constant 1 : index
    %c64_42 = arith.constant 64 : index
    %c0_43 = arith.constant 0 : index
    %185 = vector.load %arg1[%c1_41, %c64_42, %c0_43] : memref<3x65x128xbf16, #tpu.memory_space<vmem>>, vector<1x1x128xbf16>
    %186 = vector.shape_cast %185 : vector<1x1x128xbf16> to vector<1x128xbf16>
    %187 = arith.extf %186 : vector<1x128xbf16> to vector<1x128xf32>
    %c0_44 = arith.constant 0 : index
    %c0_45 = arith.constant 0 : index
    %188 = vector.load %arg3[%c0_44, %c0_45] : memref<64x32xbf16, #tpu.memory_space<vmem>>, vector<64x32xbf16>
    %cst_46 = arith.constant dense<0.000000e+00> : vector<64x128xf32>
    %189 = tpu.matmul %188, %182, %cst_46 {dimension_numbers = #tpu.dot_dimension_numbers<[1], [0], [0], [1], [0, 0, 1, 1], [], []>} : vector<64x32xbf16>, vector<32x128xbf16>, vector<64x128xf32> -> vector<64x128xf32>
    %190 = vector.broadcast %187 : vector<1x128xf32> to vector<64x128xf32>
    %191 = arith.addf %189, %190 : vector<64x128xf32>
    %cst_47 = arith.constant 0.000000e+00 : f32
    %192 = vector.broadcast %cst_47 : f32 to vector<8x32xf32>
    %cst_48 = arith.constant 0.000000e+00 : f32
    %193 = vector.broadcast %cst_48 : f32 to vector<8x32xf32>
    %194 = vector.extract_strided_slice %191 {offsets = [0, 0], sizes = [8, 128], strides = [1, 1]} : vector<64x128xf32> to vector<8x128xf32>
    %195 = arith.truncf %192 : vector<8x32xf32> to vector<8x32xbf16>
    %cst_49 = arith.constant dense<0.000000e+00> : vector<8x128xf32>
    %196 = tpu.matmul %195, %184, %cst_49 {dimension_numbers = #tpu.dot_dimension_numbers<[1], [0], [0], [1], [0, 0, 1, 1], [], []>} : vector<8x32xbf16>, vector<32x128xbf16>, vector<8x128xf32> -> vector<8x128xf32>
    %197 = arith.addf %194, %196 : vector<8x128xf32>
    %198 = arith.negf %197 : vector<8x128xf32>
    %199 = math.exp %198 : vector<8x128xf32>
    %cst_50 = arith.constant 1.000000e+00 : f32
    %200 = vector.broadcast %cst_50 : f32 to vector<8x128xf32>
    %201 = arith.addf %200, %199 : vector<8x128xf32>
    %202 = arith.divf %200, %201 : vector<8x128xf32>
    %203 = math.tanh %197 : vector<8x128xf32>
    %204 = vector.extract_strided_slice %202 {offsets = [0, 0], sizes = [8, 32], strides = [1, 1]} : vector<8x128xf32> to vector<8x32xf32>
    %205 = vector.extract_strided_slice %202 {offsets = [0, 32], sizes = [8, 32], strides = [1, 1]} : vector<8x128xf32> to vector<8x32xf32>
    %206 = vector.extract_strided_slice %202 {offsets = [0, 64], sizes = [8, 32], strides = [1, 1]} : vector<8x128xf32> to vector<8x32xf32>
    %207 = vector.extract_strided_slice %203 {offsets = [0, 96], sizes = [8, 32], strides = [1, 1]} : vector<8x128xf32> to vector<8x32xf32>
    %208 = arith.mulf %205, %193 : vector<8x32xf32>
    %209 = arith.mulf %204, %207 : vector<8x32xf32>
    %210 = arith.addf %208, %209 : vector<8x32xf32>
    %211 = math.tanh %210 : vector<8x32xf32>
    %212 = arith.mulf %206, %211 : vector<8x32xf32>
    %213 = vector.extract_strided_slice %191 {offsets = [8, 0], sizes = [8, 128], strides = [1, 1]} : vector<64x128xf32> to vector<8x128xf32>
    %214 = arith.truncf %212 : vector<8x32xf32> to vector<8x32xbf16>
    %cst_51 = arith.constant dense<0.000000e+00> : vector<8x128xf32>
    %215 = tpu.matmul %214, %184, %cst_51 {dimension_numbers = #tpu.dot_dimension_numbers<[1], [0], [0], [1], [0, 0, 1, 1], [], []>} : vector<8x32xbf16>, vector<32x128xbf16>, vector<8x128xf32> -> vector<8x128xf32>
    %216 = arith.addf %213, %215 : vector<8x128xf32>
    %217 = arith.negf %216 : vector<8x128xf32>
    %218 = math.exp %217 : vector<8x128xf32>
    %cst_52 = arith.constant 1.000000e+00 : f32
    %219 = vector.broadcast %cst_52 : f32 to vector<8x128xf32>
    %220 = arith.addf %219, %218 : vector<8x128xf32>
    %221 = arith.divf %219, %220 : vector<8x128xf32>
    %222 = math.tanh %216 : vector<8x128xf32>
    %223 = vector.extract_strided_slice %221 {offsets = [0, 0], sizes = [8, 32], strides = [1, 1]} : vector<8x128xf32> to vector<8x32xf32>
    %224 = vector.extract_strided_slice %221 {offsets = [0, 32], sizes = [8, 32], strides = [1, 1]} : vector<8x128xf32> to vector<8x32xf32>
    %225 = vector.extract_strided_slice %221 {offsets = [0, 64], sizes = [8, 32], strides = [1, 1]} : vector<8x128xf32> to vector<8x32xf32>
    %226 = vector.extract_strided_slice %222 {offsets = [0, 96], sizes = [8, 32], strides = [1, 1]} : vector<8x128xf32> to vector<8x32xf32>
    %227 = arith.mulf %224, %210 : vector<8x32xf32>
    %228 = arith.mulf %223, %226 : vector<8x32xf32>
    %229 = arith.addf %227, %228 : vector<8x32xf32>
    %230 = math.tanh %229 : vector<8x32xf32>
    %231 = arith.mulf %225, %230 : vector<8x32xf32>
    %232 = vector.extract_strided_slice %191 {offsets = [16, 0], sizes = [8, 128], strides = [1, 1]} : vector<64x128xf32> to vector<8x128xf32>
    %233 = arith.truncf %231 : vector<8x32xf32> to vector<8x32xbf16>
    %cst_53 = arith.constant dense<0.000000e+00> : vector<8x128xf32>
    %234 = tpu.matmul %233, %184, %cst_53 {dimension_numbers = #tpu.dot_dimension_numbers<[1], [0], [0], [1], [0, 0, 1, 1], [], []>} : vector<8x32xbf16>, vector<32x128xbf16>, vector<8x128xf32> -> vector<8x128xf32>
    %235 = arith.addf %232, %234 : vector<8x128xf32>
    %236 = arith.negf %235 : vector<8x128xf32>
    %237 = math.exp %236 : vector<8x128xf32>
    %cst_54 = arith.constant 1.000000e+00 : f32
    %238 = vector.broadcast %cst_54 : f32 to vector<8x128xf32>
    %239 = arith.addf %238, %237 : vector<8x128xf32>
    %240 = arith.divf %238, %239 : vector<8x128xf32>
    %241 = math.tanh %235 : vector<8x128xf32>
    %242 = vector.extract_strided_slice %240 {offsets = [0, 0], sizes = [8, 32], strides = [1, 1]} : vector<8x128xf32> to vector<8x32xf32>
    %243 = vector.extract_strided_slice %240 {offsets = [0, 32], sizes = [8, 32], strides = [1, 1]} : vector<8x128xf32> to vector<8x32xf32>
    %244 = vector.extract_strided_slice %240 {offsets = [0, 64], sizes = [8, 32], strides = [1, 1]} : vector<8x128xf32> to vector<8x32xf32>
    %245 = vector.extract_strided_slice %241 {offsets = [0, 96], sizes = [8, 32], strides = [1, 1]} : vector<8x128xf32> to vector<8x32xf32>
    %246 = arith.mulf %243, %229 : vector<8x32xf32>
    %247 = arith.mulf %242, %245 : vector<8x32xf32>
    %248 = arith.addf %246, %247 : vector<8x32xf32>
    %249 = math.tanh %248 : vector<8x32xf32>
    %250 = arith.mulf %244, %249 : vector<8x32xf32>
    %251 = vector.extract_strided_slice %191 {offsets = [24, 0], sizes = [8, 128], strides = [1, 1]} : vector<64x128xf32> to vector<8x128xf32>
    %252 = arith.truncf %250 : vector<8x32xf32> to vector<8x32xbf16>
    %cst_55 = arith.constant dense<0.000000e+00> : vector<8x128xf32>
    %253 = tpu.matmul %252, %184, %cst_55 {dimension_numbers = #tpu.dot_dimension_numbers<[1], [0], [0], [1], [0, 0, 1, 1], [], []>} : vector<8x32xbf16>, vector<32x128xbf16>, vector<8x128xf32> -> vector<8x128xf32>
    %254 = arith.addf %251, %253 : vector<8x128xf32>
    %255 = arith.negf %254 : vector<8x128xf32>
    %256 = math.exp %255 : vector<8x128xf32>
    %cst_56 = arith.constant 1.000000e+00 : f32
    %257 = vector.broadcast %cst_56 : f32 to vector<8x128xf32>
    %258 = arith.addf %257, %256 : vector<8x128xf32>
    %259 = arith.divf %257, %258 : vector<8x128xf32>
    %260 = math.tanh %254 : vector<8x128xf32>
    %261 = vector.extract_strided_slice %259 {offsets = [0, 0], sizes = [8, 32], strides = [1, 1]} : vector<8x128xf32> to vector<8x32xf32>
    %262 = vector.extract_strided_slice %259 {offsets = [0, 32], sizes = [8, 32], strides = [1, 1]} : vector<8x128xf32> to vector<8x32xf32>
    %263 = vector.extract_strided_slice %259 {offsets = [0, 64], sizes = [8, 32], strides = [1, 1]} : vector<8x128xf32> to vector<8x32xf32>
    %264 = vector.extract_strided_slice %260 {offsets = [0, 96], sizes = [8, 32], strides = [1, 1]} : vector<8x128xf32> to vector<8x32xf32>
    %265 = arith.mulf %262, %248 : vector<8x32xf32>
    %266 = arith.mulf %261, %264 : vector<8x32xf32>
    %267 = arith.addf %265, %266 : vector<8x32xf32>
    %268 = math.tanh %267 : vector<8x32xf32>
    %269 = arith.mulf %263, %268 : vector<8x32xf32>
    %270 = vector.extract_strided_slice %191 {offsets = [32, 0], sizes = [8, 128], strides = [1, 1]} : vector<64x128xf32> to vector<8x128xf32>
    %271 = arith.truncf %269 : vector<8x32xf32> to vector<8x32xbf16>
    %cst_57 = arith.constant dense<0.000000e+00> : vector<8x128xf32>
    %272 = tpu.matmul %271, %184, %cst_57 {dimension_numbers = #tpu.dot_dimension_numbers<[1], [0], [0], [1], [0, 0, 1, 1], [], []>} : vector<8x32xbf16>, vector<32x128xbf16>, vector<8x128xf32> -> vector<8x128xf32>
    %273 = arith.addf %270, %272 : vector<8x128xf32>
    %274 = arith.negf %273 : vector<8x128xf32>
    %275 = math.exp %274 : vector<8x128xf32>
    %cst_58 = arith.constant 1.000000e+00 : f32
    %276 = vector.broadcast %cst_58 : f32 to vector<8x128xf32>
    %277 = arith.addf %276, %275 : vector<8x128xf32>
    %278 = arith.divf %276, %277 : vector<8x128xf32>
    %279 = math.tanh %273 : vector<8x128xf32>
    %280 = vector.extract_strided_slice %278 {offsets = [0, 0], sizes = [8, 32], strides = [1, 1]} : vector<8x128xf32> to vector<8x32xf32>
    %281 = vector.extract_strided_slice %278 {offsets = [0, 32], sizes = [8, 32], strides = [1, 1]} : vector<8x128xf32> to vector<8x32xf32>
    %282 = vector.extract_strided_slice %278 {offsets = [0, 64], sizes = [8, 32], strides = [1, 1]} : vector<8x128xf32> to vector<8x32xf32>
    %283 = vector.extract_strided_slice %279 {offsets = [0, 96], sizes = [8, 32], strides = [1, 1]} : vector<8x128xf32> to vector<8x32xf32>
    %284 = arith.mulf %281, %267 : vector<8x32xf32>
    %285 = arith.mulf %280, %283 : vector<8x32xf32>
    %286 = arith.addf %284, %285 : vector<8x32xf32>
    %287 = math.tanh %286 : vector<8x32xf32>
    %288 = arith.mulf %282, %287 : vector<8x32xf32>
    %289 = vector.extract_strided_slice %191 {offsets = [40, 0], sizes = [8, 128], strides = [1, 1]} : vector<64x128xf32> to vector<8x128xf32>
    %290 = arith.truncf %288 : vector<8x32xf32> to vector<8x32xbf16>
    %cst_59 = arith.constant dense<0.000000e+00> : vector<8x128xf32>
    %291 = tpu.matmul %290, %184, %cst_59 {dimension_numbers = #tpu.dot_dimension_numbers<[1], [0], [0], [1], [0, 0, 1, 1], [], []>} : vector<8x32xbf16>, vector<32x128xbf16>, vector<8x128xf32> -> vector<8x128xf32>
    %292 = arith.addf %289, %291 : vector<8x128xf32>
    %293 = arith.negf %292 : vector<8x128xf32>
    %294 = math.exp %293 : vector<8x128xf32>
    %cst_60 = arith.constant 1.000000e+00 : f32
    %295 = vector.broadcast %cst_60 : f32 to vector<8x128xf32>
    %296 = arith.addf %295, %294 : vector<8x128xf32>
    %297 = arith.divf %295, %296 : vector<8x128xf32>
    %298 = math.tanh %292 : vector<8x128xf32>
    %299 = vector.extract_strided_slice %297 {offsets = [0, 0], sizes = [8, 32], strides = [1, 1]} : vector<8x128xf32> to vector<8x32xf32>
    %300 = vector.extract_strided_slice %297 {offsets = [0, 32], sizes = [8, 32], strides = [1, 1]} : vector<8x128xf32> to vector<8x32xf32>
    %301 = vector.extract_strided_slice %297 {offsets = [0, 64], sizes = [8, 32], strides = [1, 1]} : vector<8x128xf32> to vector<8x32xf32>
    %302 = vector.extract_strided_slice %298 {offsets = [0, 96], sizes = [8, 32], strides = [1, 1]} : vector<8x128xf32> to vector<8x32xf32>
    %303 = arith.mulf %300, %286 : vector<8x32xf32>
    %304 = arith.mulf %299, %302 : vector<8x32xf32>
    %305 = arith.addf %303, %304 : vector<8x32xf32>
    %306 = math.tanh %305 : vector<8x32xf32>
    %307 = arith.mulf %301, %306 : vector<8x32xf32>
    %308 = vector.extract_strided_slice %191 {offsets = [48, 0], sizes = [8, 128], strides = [1, 1]} : vector<64x128xf32> to vector<8x128xf32>
    %309 = arith.truncf %307 : vector<8x32xf32> to vector<8x32xbf16>
    %cst_61 = arith.constant dense<0.000000e+00> : vector<8x128xf32>
    %310 = tpu.matmul %309, %184, %cst_61 {dimension_numbers = #tpu.dot_dimension_numbers<[1], [0], [0], [1], [0, 0, 1, 1], [], []>} : vector<8x32xbf16>, vector<32x128xbf16>, vector<8x128xf32> -> vector<8x128xf32>
    %311 = arith.addf %308, %310 : vector<8x128xf32>
    %312 = arith.negf %311 : vector<8x128xf32>
    %313 = math.exp %312 : vector<8x128xf32>
    %cst_62 = arith.constant 1.000000e+00 : f32
    %314 = vector.broadcast %cst_62 : f32 to vector<8x128xf32>
    %315 = arith.addf %314, %313 : vector<8x128xf32>
    %316 = arith.divf %314, %315 : vector<8x128xf32>
    %317 = math.tanh %311 : vector<8x128xf32>
    %318 = vector.extract_strided_slice %316 {offsets = [0, 0], sizes = [8, 32], strides = [1, 1]} : vector<8x128xf32> to vector<8x32xf32>
    %319 = vector.extract_strided_slice %316 {offsets = [0, 32], sizes = [8, 32], strides = [1, 1]} : vector<8x128xf32> to vector<8x32xf32>
    %320 = vector.extract_strided_slice %316 {offsets = [0, 64], sizes = [8, 32], strides = [1, 1]} : vector<8x128xf32> to vector<8x32xf32>
    %321 = vector.extract_strided_slice %317 {offsets = [0, 96], sizes = [8, 32], strides = [1, 1]} : vector<8x128xf32> to vector<8x32xf32>
    %322 = arith.mulf %319, %305 : vector<8x32xf32>
    %323 = arith.mulf %318, %321 : vector<8x32xf32>
    %324 = arith.addf %322, %323 : vector<8x32xf32>
    %325 = math.tanh %324 : vector<8x32xf32>
    %326 = arith.mulf %320, %325 : vector<8x32xf32>
    %327 = vector.extract_strided_slice %191 {offsets = [56, 0], sizes = [8, 128], strides = [1, 1]} : vector<64x128xf32> to vector<8x128xf32>
    %328 = arith.truncf %326 : vector<8x32xf32> to vector<8x32xbf16>
    %cst_63 = arith.constant dense<0.000000e+00> : vector<8x128xf32>
    %329 = tpu.matmul %328, %184, %cst_63 {dimension_numbers = #tpu.dot_dimension_numbers<[1], [0], [0], [1], [0, 0, 1, 1], [], []>} : vector<8x32xbf16>, vector<32x128xbf16>, vector<8x128xf32> -> vector<8x128xf32>
    %330 = arith.addf %327, %329 : vector<8x128xf32>
    %331 = arith.negf %330 : vector<8x128xf32>
    %332 = math.exp %331 : vector<8x128xf32>
    %cst_64 = arith.constant 1.000000e+00 : f32
    %333 = vector.broadcast %cst_64 : f32 to vector<8x128xf32>
    %334 = arith.addf %333, %332 : vector<8x128xf32>
    %335 = arith.divf %333, %334 : vector<8x128xf32>
    %336 = math.tanh %330 : vector<8x128xf32>
    %337 = vector.extract_strided_slice %335 {offsets = [0, 0], sizes = [8, 32], strides = [1, 1]} : vector<8x128xf32> to vector<8x32xf32>
    %338 = vector.extract_strided_slice %335 {offsets = [0, 32], sizes = [8, 32], strides = [1, 1]} : vector<8x128xf32> to vector<8x32xf32>
    %339 = vector.extract_strided_slice %335 {offsets = [0, 64], sizes = [8, 32], strides = [1, 1]} : vector<8x128xf32> to vector<8x32xf32>
    %340 = vector.extract_strided_slice %336 {offsets = [0, 96], sizes = [8, 32], strides = [1, 1]} : vector<8x128xf32> to vector<8x32xf32>
    %341 = arith.mulf %338, %324 : vector<8x32xf32>
    %342 = arith.mulf %337, %340 : vector<8x32xf32>
    %343 = arith.addf %341, %342 : vector<8x32xf32>
    %344 = math.tanh %343 : vector<8x32xf32>
    %345 = arith.mulf %339, %344 : vector<8x32xf32>
    %c2 = arith.constant 2 : index
    %c0_65 = arith.constant 0 : index
    %c0_66 = arith.constant 0 : index
    %346 = vector.load %arg1[%c2, %c0_65, %c0_66] : memref<3x65x128xbf16, #tpu.memory_space<vmem>>, vector<1x32x128xbf16>
    %347 = vector.shape_cast %346 : vector<1x32x128xbf16> to vector<32x128xbf16>
    %c2_67 = arith.constant 2 : index
    %c32_68 = arith.constant 32 : index
    %c0_69 = arith.constant 0 : index
    %348 = vector.load %arg1[%c2_67, %c32_68, %c0_69] : memref<3x65x128xbf16, #tpu.memory_space<vmem>>, vector<1x1x128xbf16>
    %349 = vector.shape_cast %348 : vector<1x1x128xbf16> to vector<1x128xbf16>
    %350 = arith.extf %349 : vector<1x128xbf16> to vector<1x128xf32>
    %351 = arith.truncf %345 : vector<8x32xf32> to vector<8x32xbf16>
    %cst_70 = arith.constant dense<0.000000e+00> : vector<8x128xf32>
    %352 = tpu.matmul %351, %347, %cst_70 {dimension_numbers = #tpu.dot_dimension_numbers<[1], [0], [0], [1], [0, 0, 1, 1], [], []>} : vector<8x32xbf16>, vector<32x128xbf16>, vector<8x128xf32> -> vector<8x128xf32>
    %353 = vector.broadcast %350 : vector<1x128xf32> to vector<8x128xf32>
    %354 = arith.addf %352, %353 : vector<8x128xf32>
    %c0_71 = arith.constant 0 : index
    %c0_72 = arith.constant 0 : index
    %355 = vector.load %arg2[%c0_71, %c0_72] : memref<8x128xf32, #tpu.memory_space<vmem>>, vector<8x128xf32>
    tpu.vector_store %arg2[%c0_71, %c0_72], %354 {strides = array<i32>} : memref<8x128xf32, #tpu.memory_space<vmem>>, vector<8x128xf32>,
    return
  }
}

</mosaic_0001>

<bundles_post_ra>
// kernel: tpu_custom_call.1
= control target key start
LH: loop header
LB: loop body
LE: loop exit
PB: predicated region body
PF: predicated region fallthrough
CT: control target
= control target key end

     0   :  { %7 = vsyncpa [#allocation4], 0  ;;  %s1829_s0 = inlined_call_operand.vmem [shape: bf16[64,32], index: 0, kind: input, shape index: {}]   ;;  %s1830_s1 = inlined_call_operand.hbm [shape: bf16[3,65,128], index: 1, kind: input, shape index: {}]   ;;  %s1831_s2 = inlined_call_operand.hbm [shape: f32[8,128], index: 2, kind: output, shape index: {}]  }
   0x1   :  { %8 = vsyncpa [#allocation5], 0  ;;  %s15_s11 = sshll.u32 %s1830_s1, 4  ;;  %s1578_s12 = smov [#allocation3]   ;;  %s16_s11 = int_to_ptr.hbm [resolvable:$true] %s15_s11 }
   0x2   :  { %s17_s13 = sshll.u32 %s1578_s12, 4  ;;  %s1579_s14 = smov 64   ;;  %s18_s13 = int_to_ptr.vmem [resolvable:$true] %s17_s13 }
   0x3   :  { %s1580_s15 = smov 4  }
   0x4   :  { %23 = dma.hbm_to_vmem [thread:$0]  %s16_s11, 1728, %s18_s13, [#allocation4], %s1579_s14, %s1579_s14, %s1580_s15  }
   0x5   :  { %1574 = dma.done.wait [#allocation4], 1728  }
   0x6   :  { %1575 = vsyncadd [#allocation4], 4294965568  ;;  %v1375_v0 = vld [vmem:[#allocation3 + $0x8] sm:$0xff]  ;;  %v1604_v1 = vld [vmem:[#allocation3 + $0x18] sm:$0xff]  ;;  %vm80_vm0 = vcmask 261120   ;;  %v1581_v5 = vmov 0  }
   0x7   :  { %99 = vmatpush.bf16.msra.mxu0 %v1375_v0  ;;  %143 = vmatpush.bf16.msra.mxu1 %v1604_v1  ;;  %v1374_v2 = vld [vmem:[#allocation3] sm:$0xff]  ;;  %v1607_v3 = vld [vmem:[#allocation3 + $0x10] sm:$0xff]  ;;  %s1582_s17 = smov 32   ;;  %s1253_s27 = sshll.u32 %s1831_s2, 4  ;;  %s1254_s27 = int_to_ptr.hbm [resolvable:$true] %s1253_s27 }
   0x8   :  { %208 = vmatpush.bf16.msra.mxu2 %v1604_v1  ;;  %272 = vmatpush.bf16.msra.mxu3 %v1604_v1  ;;  %v1378_v4 = vld [vmem:[%s1829_s0] sm:$0xff] }
   0x9   :  { %v37_v6 = vld [vmem:[#allocation3 + $0x20] sm:$0x1] }
   0xa   :  { %v38_v7 = vunpack.c.l.bf16 %v37_v6 }
   0xb   :  { %100 = vmatpush.bf16.msra.mxu0 %v1374_v2  ;;  %144 = vmatpush.bf16.msra.mxu1 %v1607_v3 }
   0xc   :  { %209 = vmatpush.bf16.msra.mxu2 %v1607_v3  ;;  %273 = vmatpush.bf16.msra.mxu3 %v1607_v3  ;;  %v1627_v8 = vperm.slane %v38_v7, 0 }
   0xe   :  { %1287 = vmatmul.msk.bf16.vlgmr.msra.gmra.mxu0 %vm80_vm0, %v1378_v4  ;;  %145 = vmatmul.bf16.vlgmr.msra.gmra.mxu1 %v1581_v5 }
   0xf   :  { %336 = vmatpush.bf16.msrb.mxu1 %v1604_v1 }
  0x10   :  { %400 = vmatpush.bf16.msrb.mxu2 %v1604_v1  ;;  %464 = vmatpush.bf16.msrb.mxu3 %v1604_v1 }
  0x13   :  { %337 = vmatpush.bf16.msrb.mxu1 %v1607_v3 }
  0x14   :  { %401 = vmatpush.bf16.msrb.mxu2 %v1607_v3  ;;  %465 = vmatpush.bf16.msrb.mxu3 %v1607_v3 }
  0x17   :  { %528 = vmatpush.bf16.msra.mxu1 %v1604_v1 }
  0x1b   :  { %529 = vmatpush.bf16.msra.mxu1 %v1607_v3 }
  0x8b   :  { %v102_v9 = vpop.f32.mrf.mxu0  ;;  %v146_v10 = vpop.f32.mrf.mxu1 }
  0x8c   :  { %v103_v11 = vadd.f32 %v102_v9, %v1627_v8 }
  0x8e   :  { %v150_v12 = vadd.f32 %v146_v10, %v103_v11 }
  0x90   :  { %1398 = vtanh.f32 %v150_v12  ;;  %v1299_v15 = vmul.f32 -1.442695, %v150_v12 }
  0x92   :  { %1400 = vpow2.f32 %v1299_v15 }
  0x93   :  { %v148_v13 = vpop.f32.mrf.mxu1  ;;  %v104_v40 = vpop.f32.mrf.mxu0 }
  0x94   :  { %v105_v41 = vadd.f32 %v104_v40, %v1627_v8 }
  0x96   :  { %v1399_v14 = vpop.eup %1398 }
  0x97   :  { %173 = vrot.lane.b32.xlu0 %v1399_v14, %s1582_s17 }
  0x98   :  { %v1401_v16 = vpop.eup %1400 }
  0x99   :  { %v154_v17 = vadd.f32 1.0, %v1401_v16 }
  0x9b   :  { %1402 = vrcp.f32 %v154_v17  ;;  %v166_v23 = vand.u32 2147483648, %v154_v17  ;;  %vm160_vm2 = vweird.f32 %v154_v17  ;;  %v164_v24 = vand.u32 2147483647, %v154_v17 }
  0x9d   :  { %v167_v26 = vor.u32 1.1754944e-38, %v166_v23  ;;  %vm165_vm4 = vcmp.eq.f32.partialorder %v164_v24, 8.507059e+37 }
  0xa1   :  { %v1403_v18 = vpop.eup %1402 }
  0xa2   :  { %v156_v19 = vmul.f32 %v1403_v18, %v154_v17  ;;  %vm161_vm1 = vweird.f32 %v1403_v18 }
  0xa3   :  { %vm162_vm3 = vmor %vm160_vm2, %vm161_vm1 }
  0xa4   :  { %v157_v20 = vsub.f32 1.0, %v156_v19 }
  0xa6   :  { %v158_v21 = vmul.f32 %v1403_v18, %v157_v20 }
  0xa8   :  { %v159_v22 = vadd.f32 %v1403_v18, %v158_v21 }
  0xaa   :  { %v163_v25 = vsel %vm162_vm3, %v1403_v18, %v159_v22 }
  0xab   :  { %v168_v28 = vsel %vm165_vm4, %v167_v26, %v163_v25 }
  0xac   :  { %v171_v30 = vmul.f32 0.0, %v168_v28 }
 0x109   :  { %v174_v27 = vpop.permute.xlu0 %173 }
 0x10a   :  { %v176_v29 = vmul.f32 %v174_v27, %v168_v28 }
 0x10c   :  { %178 = vrot.lane.b32.xlu0 %v176_v29, %s1582_s17 }
 0x17e   :  { %v179_v31 = vpop.permute.xlu0 %178 }
 0x17f   :  { %v181_v32 = vadd.f32 %v179_v31, %v171_v30 }
 0x181   :  { %1404 = vtanh.f32 %v181_v32 }
 0x187   :  { %v1405_v33 = vpop.eup %1404 }
 0x188   :  { %184 = vrot.lane.b32.xlu1 %v1405_v33, %s1582_s17 }
 0x1fa   :  { %v185_v34 = vpop.permute.xlu1 %184 }
 0x1fb   :  { %v187_v35 = vmul.f32 %v185_v34, %v168_v28 }
 0x1fd   :  { %v1633_v36 = vpack.c.bf16 %v187_v35, %v187_v35 }
 0x1ff   :  { %v195_v37 = vunpack.c.l.b16 %v1633_v36 }
 0x201   :  { %v196_v38 = vpack.c.b16 %v195_v37, %v195_v37 }
 0x203   :  { %197 = vrot.lane.b32.xlu1 %v196_v38, %s1579_s14 }
 0x275   :  { %v198_v39 = vpop.permute.xlu1 %197 }
 0x276   :  { %1300 = vmatmul.msk.bf16.vlgmr.msra.gmra.mxu2 %vm80_vm0, %v198_v39 }
 0x277   :  { %592 = vmatpush.bf16.msra.mxu2 %v1604_v1  ;;  %v1379_v1 = vld [vmem:[%s1829_s0 + $0x8] sm:$0xff] }
 0x278   :  { %1288 = vmatmul.msk.bf16.gmra.mxu0 %vm80_vm0, %v1379_v1 }
 0x27b   :  { %593 = vmatpush.bf16.msra.mxu2 %v1607_v3 }
 0x2f5   :  { %v107_v10 = vpop.f32.mrf.mxu0 }
 0x2f6   :  { %v108_v11 = vadd.f32 %v107_v10, %v1627_v8 }
 0x2f9   :  { %v211_v42 = vpop.f32.mrf.mxu2 }
 0x2fa   :  { %v215_v43 = vadd.f32 %v211_v42, %v105_v41 }
 0x2fc   :  { %1406 = vtanh.f32 %v215_v43  ;;  %v1301_v46 = vmul.f32 -1.442695, %v215_v43 }
 0x2fd   :  { %v109_v42 = vpop.f32.mrf.mxu0 }
 0x2fe   :  { %1408 = vpow2.f32 %v1301_v46  ;;  %v110_v43 = vadd.f32 %v109_v42, %v1627_v8 }
 0x301   :  { %v213_v44 = vpop.f32.mrf.mxu2 }
 0x302   :  { %v1407_v45 = vpop.eup %1406 }
 0x303   :  { %238 = vrot.lane.b32.xlu2 %v1407_v45, %s1582_s17 }
 0x304   :  { %v1409_v47 = vpop.eup %1408 }
 0x305   :  { %v219_v48 = vadd.f32 1.0, %v1409_v47 }
 0x307   :  { %1410 = vrcp.f32 %v219_v48  ;;  %v231_v54 = vand.u32 2147483648, %v219_v48  ;;  %vm225_vm6 = vweird.f32 %v219_v48  ;;  %v229_v55 = vand.u32 2147483647, %v219_v48 }
 0x309   :  { %v232_v57 = vor.u32 1.1754944e-38, %v231_v54  ;;  %vm230_vm8 = vcmp.eq.f32.partialorder %v229_v55, 8.507059e+37 }
 0x30d   :  { %v1411_v49 = vpop.eup %1410 }
 0x30e   :  { %v221_v50 = vmul.f32 %v1411_v49, %v219_v48  ;;  %vm226_vm5 = vweird.f32 %v1411_v49 }
 0x30f   :  { %vm227_vm7 = vmor %vm225_vm6, %vm226_vm5 }
 0x310   :  { %v222_v51 = vsub.f32 1.0, %v221_v50 }
 0x312   :  { %v223_v52 = vmul.f32 %v1411_v49, %v222_v51 }
 0x314   :  { %v224_v53 = vadd.f32 %v1411_v49, %v223_v52 }
 0x316   :  { %v228_v56 = vsel %vm227_vm7, %v1411_v49, %v224_v53 }
 0x317   :  { %v233_v59 = vsel %vm230_vm8, %v232_v57, %v228_v56 }
 0x318   :  { %v236_v61 = vmul.f32 %v233_v59, %v181_v32 }
 0x35d   :  { %v239_v58 = vpop.permute.xlu2 %238 }
 0x35e   :  { %v241_v60 = vmul.f32 %v239_v58, %v233_v59 }
 0x360   :  { %243 = vrot.lane.b32.xlu2 %v241_v60, %s1582_s17 }
 0x3ba   :  { %v244_v62 = vpop.permute.xlu2 %243 }
 0x3bb   :  { %v246_v63 = vadd.f32 %v244_v62, %v236_v61 }
 0x3bd   :  { %1412 = vtanh.f32 %v246_v63 }
 0x3c3   :  { %v1413_v0 = vpop.eup %1412 }
 0x3c4   :  { %249 = vrot.lane.b32.xlu0 %v1413_v0, %s1582_s17 }
 0x436   :  { %v250_v2 = vpop.permute.xlu0 %249 }
 0x437   :  { %v252_v3 = vmul.f32 %v250_v2, %v233_v59 }
 0x439   :  { %v1648_v4 = vpack.c.bf16 %v252_v3, %v252_v3  ;;  %v1380_v3 = vld [vmem:[%s1829_s0 + $0x10] sm:$0xff] }
 0x43a   :  { %1289 = vmatmul.msk.bf16.gmra.mxu0 %vm80_vm0, %v1380_v3 }
 0x43b   :  { %v259_v6 = vunpack.c.l.b16 %v1648_v4 }
 0x43d   :  { %v260_v7 = vpack.c.b16 %v259_v6, %v259_v6 }
 0x43f   :  { %261 = vrot.lane.b32.xlu1 %v260_v7, %s1579_s14 }
 0x4b1   :  { %v262_v9 = vpop.permute.xlu1 %261 }
 0x4b2   :  { %1302 = vmatmul.msk.bf16.vlgmr.msra.gmra.mxu3 %vm80_vm0, %v262_v9 }
 0x535   :  { %v275_v12 = vpop.f32.mrf.mxu3 }
 0x536   :  { %v279_v13 = vadd.f32 %v275_v12, %v108_v11 }
 0x538   :  { %1414 = vtanh.f32 %v279_v13  ;;  %v1303_v16 = vmul.f32 -1.442695, %v279_v13  ;;  %v112_v13 = vpop.f32.mrf.mxu0 }
 0x53a   :  { %1416 = vpow2.f32 %v1303_v16 }
 0x53d   :  { %v277_v14 = vpop.f32.mrf.mxu3 }
 0x53e   :  { %v1415_v15 = vpop.eup %1414  ;;  %v113_v14 = vadd.f32 %v112_v13, %v1627_v8  ;;  %v1382_v13 = vld [vmem:[#allocation3 + $0x24] sm:$0xff] }
 0x53f   :  { %302 = vrot.lane.b32.xlu2 %v1415_v15, %s1582_s17 }
 0x540   :  { %v1417_v17 = vpop.eup %1416 }
 0x541   :  { %v283_v18 = vadd.f32 1.0, %v1417_v17 }
 0x543   :  { %1418 = vrcp.f32 %v283_v18  ;;  %v295_v24 = vand.u32 2147483648, %v283_v18  ;;  %vm289_vm10 = vweird.f32 %v283_v18  ;;  %v293_v25 = vand.u32 2147483647, %v283_v18 }
 0x545   :  { %v296_v27 = vor.u32 1.1754944e-38, %v295_v24  ;;  %vm294_vm12 = vcmp.eq.f32.partialorder %v293_v25, 8.507059e+37 }
 0x549   :  { %v1419_v19 = vpop.eup %1418 }
 0x54a   :  { %v285_v20 = vmul.f32 %v1419_v19, %v283_v18  ;;  %vm290_vm9 = vweird.f32 %v1419_v19 }
 0x54b   :  { %vm291_vm11 = vmor %vm289_vm10, %vm290_vm9  ;;  %vm193_vm10 = vcmask 257024  }
 0x54c   :  { %v286_v21 = vsub.f32 1.0, %v285_v20 }
 0x54e   :  { %v287_v22 = vmul.f32 %v1419_v19, %v286_v21 }
 0x550   :  { %v288_v23 = vadd.f32 %v1419_v19, %v287_v22 }
 0x552   :  { %v292_v26 = vsel %vm291_vm11, %v1419_v19, %v288_v23 }
 0x553   :  { %v297_v29 = vsel %vm294_vm12, %v296_v27, %v292_v26 }
 0x554   :  { %v300_v31 = vmul.f32 %v297_v29, %v246_v63 }
 0x599   :  { %v303_v28 = vpop.permute.xlu2 %302 }
 0x59a   :  { %v305_v30 = vmul.f32 %v303_v28, %v297_v29 }
 0x59c   :  { %307 = vrot.lane.b32.xlu0 %v305_v30, %s1582_s17 }
 0x60e   :  { %v308_v32 = vpop.permute.xlu0 %307 }
 0x60f   :  { %v310_v33 = vadd.f32 %v308_v32, %v300_v31 }
 0x611   :  { %1420 = vtanh.f32 %v310_v33 }
 0x617   :  { %v1421_v34 = vpop.eup %1420 }
 0x618   :  { %313 = vrot.lane.b32.xlu1 %v1421_v34, %s1582_s17 }
 0x68a   :  { %v314_v35 = vpop.permute.xlu1 %313 }
 0x68b   :  { %v316_v37 = vmul.f32 %v314_v35, %v297_v29 }
 0x68d   :  { %v1657_v38 = vpack.c.bf16 %v316_v37, %v316_v37 }
 0x68f   :  { %v323_v39 = vunpack.c.l.b16 %v1657_v38 }
 0x691   :  { %v324_v40 = vpack.c.b16 %v323_v39, %v323_v39 }
 0x693   :  { %325 = vrot.lane.b32.xlu2 %v324_v40, %s1579_s14 }
 0x6ed   :  { %v326_v41 = vpop.permute.xlu2 %325 }
 0x6ee   :  { %1304 = vmatmul.msk.bf16.vlgmr.msrb.gmra.mxu1 %vm80_vm0, %v326_v41 }
 0x76b   :  { %v339_v44 = vpop.f32.mrf.mxu1 }
 0x76c   :  { %v343_v45 = vadd.f32 %v339_v44, %v110_v43 }
 0x76e   :  { %1422 = vtanh.f32 %v343_v45  ;;  %v1305_v48 = vmul.f32 -1.442695, %v343_v45 }
 0x770   :  { %1424 = vpow2.f32 %v1305_v48 }
 0x773   :  { %v341_v46 = vpop.f32.mrf.mxu1 }
 0x774   :  { %v1423_v47 = vpop.eup %1422  ;;  %v114_v46 = vpop.f32.mrf.mxu0 }
 0x775   :  { %366 = vrot.lane.b32.xlu0 %v1423_v47, %s1582_s17  ;;  %v115_v47 = vadd.f32 %v114_v46, %v1627_v8 }
 0x776   :  { %v1425_v49 = vpop.eup %1424 }
 0x777   :  { %v347_v50 = vadd.f32 1.0, %v1425_v49 }
 0x779   :  { %1426 = vrcp.f32 %v347_v50  ;;  %v359_v56 = vand.u32 2147483648, %v347_v50  ;;  %vm353_vm14 = vweird.f32 %v347_v50  ;;  %v357_v57 = vand.u32 2147483647, %v347_v50 }
 0x77b   :  { %v360_v59 = vor.u32 1.1754944e-38, %v359_v56  ;;  %vm358_vm1 = vcmp.eq.f32.partialorder %v357_v57, 8.507059e+37 }
 0x77f   :  { %v1427_v51 = vpop.eup %1426 }
 0x780   :  { %v349_v52 = vmul.f32 %v1427_v51, %v347_v50  ;;  %vm354_vm13 = vweird.f32 %v1427_v51 }
 0x781   :  { %vm355_vm15 = vmor %vm353_vm14, %vm354_vm13 }
 0x782   :  { %v350_v53 = vsub.f32 1.0, %v349_v52 }
 0x784   :  { %v351_v54 = vmul.f32 %v1427_v51, %v350_v53 }
 0x786   :  { %v352_v55 = vadd.f32 %v1427_v51, %v351_v54 }
 0x788   :  { %v356_v58 = vsel %vm355_vm15, %v1427_v51, %v352_v55 }
 0x789   :  { %v361_v61 = vsel %vm358_vm1, %v360_v59, %v356_v58 }
 0x78a   :  { %v364_v63 = vmul.f32 %v361_v61, %v310_v33 }
 0x7e7   :  { %v367_v60 = vpop.permute.xlu0 %366 }
 0x7e8   :  { %v369_v62 = vmul.f32 %v367_v60, %v361_v61 }
 0x7ea   :  { %371 = vrot.lane.b32.xlu1 %v369_v62, %s1582_s17 }
 0x85c   :  { %v372_v0 = vpop.permute.xlu1 %371 }
 0x85d   :  { %v374_v1 = vadd.f32 %v372_v0, %v364_v63 }
 0x85f   :  { %1428 = vtanh.f32 %v374_v1 }
 0x865   :  { %v1429_v2 = vpop.eup %1428 }
 0x866   :  { %377 = vrot.lane.b32.xlu2 %v1429_v2, %s1582_s17 }
 0x8c0   :  { %v378_v6 = vpop.permute.xlu2 %377 }
 0x8c1   :  { %v380_v7 = vmul.f32 %v378_v6, %v361_v61 }
 0x8c3   :  { %v1670_v9 = vpack.c.bf16 %v380_v7, %v380_v7 }
 0x8c5   :  { %v387_v10 = vunpack.c.l.b16 %v1670_v9 }
 0x8c7   :  { %v388_v11 = vpack.c.b16 %v387_v10, %v387_v10 }
 0x8c9   :  { %389 = vrot.lane.b32.xlu0 %v388_v11, %s1579_s14 }
 0x93b   :  { %v390_v12 = vpop.permute.xlu0 %389 }
 0x93c   :  { %1306 = vmatmul.msk.bf16.vlgmr.msrb.gmra.mxu2 %vm80_vm0, %v390_v12  ;;  %v1383_v12 = vld [vmem:[#allocation3 + $0x2c] sm:$0xff] }
 0x93d   :  { %713 = vmatpush.bf16.msra.mxu3 %v1383_v12 }
 0x941   :  { %714 = vmatpush.bf16.msra.mxu3 %v1382_v13 }
 0x9bf   :  { %v403_v15 = vpop.f32.mrf.mxu2 }
 0x9c0   :  { %v407_v16 = vadd.f32 %v403_v15, %v113_v14 }
 0x9c2   :  { %1430 = vtanh.f32 %v407_v16  ;;  %v1307_v19 = vmul.f32 -1.442695, %v407_v16 }
 0x9c4   :  { %1432 = vpow2.f32 %v1307_v19 }
 0x9c7   :  { %v405_v17 = vpop.f32.mrf.mxu2 }
 0x9c8   :  { %v1431_v18 = vpop.eup %1430 }
 0x9c9   :  { %430 = vrot.lane.b32.xlu1 %v1431_v18, %s1582_s17 }
 0x9ca   :  { %v1433_v20 = vpop.eup %1432 }
 0x9cb   :  { %v411_v21 = vadd.f32 1.0, %v1433_v20  ;;  %v1706_v20 = vld [vmem:[#allocation3 + $0x3c] sm:$0xff] }
 0x9cc   :  { %754 = vmatpush.bf16.msrb.mxu1 %v1706_v20  ;;  %812 = vmatpush.bf16.msrb.mxu2 %v1706_v20 }
 0x9cd   :  { %1434 = vrcp.f32 %v411_v21  ;;  %v423_v27 = vand.u32 2147483648, %v411_v21  ;;  %vm417_vm3 = vweird.f32 %v411_v21  ;;  %v421_v28 = vand.u32 2147483647, %v411_v21  ;;  %870 = vmatpush.bf16.msrb.mxu0 %v1706_v20 }
 0x9cf   :  { %v424_v30 = vor.u32 1.1754944e-38, %v423_v27  ;;  %vm422_vm5 = vcmp.eq.f32.partialorder %v421_v28, 8.507059e+37  ;;  %v652_v27 = vld [vmem:[#allocation3 + $0x44] sm:$0x1] }
 0x9d0   :  { %v653_v28 = vunpack.c.l.bf16 %v652_v27 }
 0x9d3   :  { %v1435_v22 = vpop.eup %1434 }
 0x9d4   :  { %v413_v23 = vmul.f32 %v1435_v22, %v411_v21  ;;  %vm418_vm2 = vweird.f32 %v1435_v22  ;;  %v1709_v21 = vld [vmem:[#allocation3 + $0x34] sm:$0xff] }
 0x9d5   :  { %vm419_vm4 = vmor %vm417_vm3, %vm418_vm2  ;;  %755 = vmatpush.bf16.msrb.mxu1 %v1709_v21  ;;  %813 = vmatpush.bf16.msrb.mxu2 %v1709_v21 }
 0x9d6   :  { %v414_v24 = vsub.f32 1.0, %v413_v23  ;;  %871 = vmatpush.bf16.msrb.mxu0 %v1709_v21 }
 0x9d8   :  { %v415_v25 = vmul.f32 %v1435_v22, %v414_v24 }
 0x9da   :  { %v416_v26 = vadd.f32 %v1435_v22, %v415_v25  ;;  %1044 = vmatpush.bf16.msra.mxu0 %v1706_v20 }
 0x9dc   :  { %v420_v29 = vsel %vm419_vm4, %v1435_v22, %v416_v26 }
 0x9dd   :  { %v425_v32 = vsel %vm422_vm5, %v424_v30, %v420_v29 }
 0x9de   :  { %v428_v34 = vmul.f32 %v425_v32, %v374_v1  ;;  %1045 = vmatpush.bf16.msra.mxu0 %v1709_v21 }
 0xa3b   :  { %v431_v31 = vpop.permute.xlu1 %430 }
 0xa3c   :  { %v433_v33 = vmul.f32 %v431_v31, %v425_v32  ;;  %v1726_v31 = vperm.slane %v653_v28, 0 }
 0xa3e   :  { %435 = vrot.lane.b32.xlu2 %v433_v33, %s1582_s17 }
 0xa98   :  { %v436_v35 = vpop.permute.xlu2 %435 }
 0xa99   :  { %v438_v37 = vadd.f32 %v436_v35, %v428_v34 }
 0xa9b   :  { %1436 = vtanh.f32 %v438_v37 }
 0xaa1   :  { %v1437_v39 = vpop.eup %1436 }
 0xaa2   :  { %441 = vrot.lane.b32.xlu0 %v1437_v39, %s1582_s17 }
 0xb14   :  { %v442_v40 = vpop.permute.xlu0 %441 }
 0xb15   :  { %v444_v41 = vmul.f32 %v442_v40, %v425_v32 }
 0xb17   :  { %v1679_v42 = vpack.c.bf16 %v444_v41, %v444_v41 }
 0xb19   :  { %v451_v43 = vunpack.c.l.b16 %v1679_v42 }
 0xb1b   :  { %v452_v44 = vpack.c.b16 %v451_v43, %v451_v43 }
 0xb1d   :  { %453 = vrot.lane.b32.xlu1 %v452_v44, %s1579_s14 }
 0xb8f   :  { %v454_v45 = vpop.permute.xlu1 %453 }
 0xb90   :  { %1308 = vmatmul.msk.bf16.vlgmr.msrb.gmra.mxu3 %vm80_vm0, %v454_v45 }
 0xc13   :  { %v467_v48 = vpop.f32.mrf.mxu3 }
 0xc14   :  { %v471_v49 = vadd.f32 %v467_v48, %v115_v47 }
 0xc16   :  { %1438 = vtanh.f32 %v471_v49  ;;  %v1309_v52 = vmul.f32 -1.442695, %v471_v49 }
 0xc18   :  { %1440 = vpow2.f32 %v1309_v52 }
 0xc1b   :  { %v469_v50 = vpop.f32.mrf.mxu3 }
 0xc1c   :  { %v1439_v51 = vpop.eup %1438 }
 0xc1d   :  { %494 = vrot.lane.b32.xlu2 %v1439_v51, %s1582_s17 }
 0xc1e   :  { %v1441_v53 = vpop.eup %1440 }
 0xc1f   :  { %v475_v54 = vadd.f32 1.0, %v1441_v53 }
 0xc21   :  { %1442 = vrcp.f32 %v475_v54  ;;  %v487_v60 = vand.u32 2147483648, %v475_v54  ;;  %vm481_vm7 = vweird.f32 %v475_v54  ;;  %v485_v61 = vand.u32 2147483647, %v475_v54 }
 0xc23   :  { %v488_v63 = vor.u32 1.1754944e-38, %v487_v60  ;;  %vm486_vm9 = vcmp.eq.f32.partialorder %v485_v61, 8.507059e+37 }
 0xc27   :  { %v1443_v55 = vpop.eup %1442 }
 0xc28   :  { %v477_v56 = vmul.f32 %v1443_v55, %v475_v54  ;;  %vm482_vm6 = vweird.f32 %v1443_v55 }
 0xc29   :  { %vm483_vm8 = vmor %vm481_vm7, %vm482_vm6 }
 0xc2a   :  { %v478_v57 = vsub.f32 1.0, %v477_v56 }
 0xc2c   :  { %v479_v58 = vmul.f32 %v1443_v55, %v478_v57 }
 0xc2e   :  { %v480_v59 = vadd.f32 %v1443_v55, %v479_v58 }
 0xc30   :  { %v484_v62 = vsel %vm483_vm8, %v1443_v55, %v480_v59 }
 0xc31   :  { %v489_v1 = vsel %vm486_vm9, %v488_v63, %v484_v62 }
 0xc32   :  { %v492_v3 = vmul.f32 %v489_v1, %v438_v37 }
 0xc77   :  { %v495_v0 = vpop.permute.xlu2 %494 }
 0xc78   :  { %v497_v2 = vmul.f32 %v495_v0, %v489_v1 }
 0xc7a   :  { %499 = vrot.lane.b32.xlu0 %v497_v2, %s1582_s17 }
 0xc82   :  { %190 = vrot.lane.b32.xlu0 %v1633_v36, %s1579_s14  ;;  %v1381_v36 = vld [vmem:[%s1829_s0 + $0x18] sm:$0xff]  ;;  %s1583_s0 = smov [#allocation6]  }
 0xc83   :  { %1290 = vmatmul.msk.bf16.gmra.mxu0 %vm80_vm0, %v1381_v36  ;;  %s1251_s24 = sshll.u32 %s1583_s0, 4  ;;  %s1252_s24 = int_to_ptr.vmem [resolvable:$true] %s1251_s24 }
 0xcec   :  { %v500_v6 = vpop.permute.xlu0 %499 }
 0xced   :  { %v1689_v7 = vadd.f32 %v500_v6, %v492_v3 }
 0xcef   :  { %1444 = vtanh.f32 %v1689_v7 }
 0xcf4   :  { %v191_v10 = vpop.permute.xlu0 %190 }
 0xcf5   :  { %v1445_v11 = vpop.eup %1444  ;;  %194 = vst.msk [vmem:[#allocation2] sm:$0xf] %vm193_vm10, %v191_v10 }
 0xcf6   :  { %505 = vrot.lane.b32.xlu1 %v1445_v11, %s1582_s17 }
 0xcfe   :  { %255 = vrot.lane.b32.xlu1 %v1648_v4, %s1579_s14 }
 0xd00   :  { %v117_v23 = vpop.f32.mrf.mxu0 }
 0xd01   :  { %v118_v24 = vadd.f32 %v117_v23, %v1627_v8 }
 0xd68   :  { %v506_v14 = vpop.permute.xlu1 %505 }
 0xd69   :  { %v508_v15 = vmul.f32 %v506_v14, %v489_v1 }
 0xd6b   :  { %v1700_v16 = vpack.c.bf16 %v508_v15, %v508_v15 }
 0xd6d   :  { %v515_v17 = vunpack.c.l.b16 %v1700_v16 }
 0xd6f   :  { %v516_v18 = vpack.c.b16 %v515_v17, %v515_v17 }
 0xd70   :  { %v256_v19 = vpop.permute.xlu1 %255 }
 0xd71   :  { %258 = vst.msk [vmem:[#allocation2 + $0x4] sm:$0xf] %vm193_vm10, %v256_v19  ;;  %517 = vrot.lane.b32.xlu2 %v516_v18, %s1579_s14 }
 0xd78   :  { %v1386_v4 = vld [vmem:[#allocation2] sm:$0xff] }
 0xd79   :  { %1338 = vmatmul.msk.bf16.vlgmr.msra.gmra.mxu3 %vm80_vm0, %v1386_v4 }
 0xdcb   :  { %v518_v22 = vpop.permute.xlu2 %517 }
 0xdcc   :  { %1310 = vmatmul.msk.bf16.vlgmr.msra.gmra.mxu1 %vm80_vm0, %v518_v22 }
 0xdcd   :  { %928 = vmatpush.bf16.msra.mxu1 %v1706_v20 }
 0xdd1   :  { %929 = vmatpush.bf16.msra.mxu1 %v1709_v21 }
 0xddc   :  { %756 = vmatmul.bf16.vlgmr.msrb.gmra.mxu1 %v1581_v5 }
 0xddd   :  { %1102 = vmatpush.bf16.msrb.mxu1 %v1706_v20 }
 0xde1   :  { %1103 = vmatpush.bf16.msrb.mxu1 %v1709_v21 }
 0xdfc   :  { %v716_v32 = vpop.f32.mrf.mxu3 }
 0xdfd   :  { %v717_v5 = vadd.f32 %v716_v32, %v1726_v31 }
 0xe04   :  { %v718_v32 = vpop.f32.mrf.mxu3 }
 0xe49   :  { %v531_v25 = vpop.f32.mrf.mxu1 }
 0xe4a   :  { %v535_v26 = vadd.f32 %v531_v25, %v118_v24 }
 0xe4c   :  { %1446 = vtanh.f32 %v535_v26  ;;  %v1311_v39 = vmul.f32 -1.442695, %v535_v26 }
 0xe51   :  { %v533_v29 = vpop.f32.mrf.mxu1 }
 0xe52   :  { %v1447_v30 = vpop.eup %1446 }
 0xe53   :  { %558 = vrot.lane.b32.xlu2 %v1447_v30, %s1582_s17 }
 0xe59   :  { %v757_v33 = vpop.f32.mrf.mxu1 }
 0xe5a   :  { %v761_v34 = vadd.f32 %v757_v33, %v717_v5  ;;  %v719_v5 = vadd.f32 %v718_v32, %v1726_v31 }
 0xe5c   :  { %1448 = vtanh.f32 %v761_v34  ;;  %v1350_v49 = vmul.f32 -1.442695, %v761_v34 }
 0xe5d   :  { %1450 = vpow2.f32 %v1311_v39 }
 0xe61   :  { %v759_v35 = vpop.f32.mrf.mxu1 }
 0xe62   :  { %v1449_v37 = vpop.eup %1448 }
 0xe63   :  { %784 = vrot.lane.b32.xlu0 %v1449_v37, %s1582_s17  ;;  %v1451_v40 = vpop.eup %1450 }
 0xe64   :  { %v539_v41 = vadd.f32 1.0, %v1451_v40 }
 0xe66   :  { %1452 = vrcp.f32 %v539_v41  ;;  %v551_v48 = vand.u32 2147483648, %v539_v41  ;;  %vm545_vm12 = vweird.f32 %v539_v41  ;;  %v549_v50 = vand.u32 2147483647, %v539_v41 }
 0xe67   :  { %1454 = vpow2.f32 %v1350_v49 }
 0xe68   :  { %v552_v52 = vor.u32 1.1754944e-38, %v551_v48  ;;  %vm550_vm14 = vcmp.eq.f32.partialorder %v549_v50, 8.507059e+37 }
 0xe6c   :  { %v1453_v43 = vpop.eup %1452 }
 0xe6d   :  { %v541_v44 = vmul.f32 %v1453_v43, %v539_v41  ;;  %vm546_vm11 = vweird.f32 %v1453_v43  ;;  %v1455_v56 = vpop.eup %1454 }
 0xe6e   :  { %vm547_vm13 = vmor %vm545_vm12, %vm546_vm11  ;;  %v765_v57 = vadd.f32 1.0, %v1455_v56 }
 0xe6f   :  { %v542_v45 = vsub.f32 1.0, %v541_v44 }
 0xe70   :  { %1456 = vrcp.f32 %v765_v57  ;;  %v777_v63 = vand.u32 2147483648, %v765_v57  ;;  %vm771_vm1 = vweird.f32 %v765_v57  ;;  %v775_v0 = vand.u32 2147483647, %v765_v57 }
 0xe71   :  { %v543_v46 = vmul.f32 %v1453_v43, %v542_v45 }
 0xe72   :  { %v778_v2 = vor.u32 1.1754944e-38, %v777_v63  ;;  %vm776_vm3 = vcmp.eq.f32.partialorder %v775_v0, 8.507059e+37 }
 0xe73   :  { %v544_v47 = vadd.f32 %v1453_v43, %v543_v46 }
 0xe75   :  { %v548_v51 = vsel %vm547_vm13, %v1453_v43, %v544_v47 }
 0xe76   :  { %v553_v54 = vsel %vm550_vm14, %v552_v52, %v548_v51  ;;  %v1457_v58 = vpop.eup %1456 }
 0xe77   :  { %v767_v59 = vmul.f32 %v1457_v58, %v765_v57  ;;  %vm772_vm15 = vweird.f32 %v1457_v58  ;;  %v556_v11 = vmul.f32 %v553_v54, %v1689_v7 }
 0xe78   :  { %vm773_vm2 = vmor %vm771_vm1, %vm772_vm15 }
 0xe79   :  { %v768_v60 = vsub.f32 1.0, %v767_v59 }
 0xe7b   :  { %v769_v61 = vmul.f32 %v1457_v58, %v768_v60 }
 0xe7d   :  { %v770_v62 = vadd.f32 %v1457_v58, %v769_v61 }
 0xe7f   :  { %v774_v1 = vsel %vm773_vm2, %v1457_v58, %v770_v62 }
 0xe80   :  { %v779_v6 = vsel %vm776_vm3, %v778_v2, %v774_v1 }
 0xe81   :  { %v782_v14 = vmul.f32 0.0, %v779_v6 }
 0xead   :  { %v559_v53 = vpop.permute.xlu2 %558 }
 0xeae   :  { %v561_v55 = vmul.f32 %v559_v53, %v553_v54 }
 0xeb0   :  { %563 = vrot.lane.b32.xlu1 %v561_v55, %s1582_s17 }
 0xed5   :  { %v785_v3 = vpop.permute.xlu0 %784 }
 0xed6   :  { %v787_v10 = vmul.f32 %v785_v3, %v779_v6 }
 0xed8   :  { %789 = vrot.lane.b32.xlu2 %v787_v10, %s1582_s17 }
 0xf22   :  { %v564_v12 = vpop.permute.xlu1 %563 }
 0xf23   :  { %v1733_v13 = vadd.f32 %v564_v12, %v556_v11 }
 0xf25   :  { %1458 = vtanh.f32 %v1733_v13 }
 0xf2b   :  { %v1459_v36 = vpop.eup %1458 }
 0xf2c   :  { %569 = vrot.lane.b32.xlu0 %v1459_v36, %s1582_s17 }
 0xf32   :  { %v790_v15 = vpop.permute.xlu2 %789 }
 0xf33   :  { %v792_v17 = vadd.f32 %v790_v15, %v782_v14 }
 0xf35   :  { %1460 = vtanh.f32 %v792_v17 }
 0xf3b   :  { %v1461_v18 = vpop.eup %1460 }
 0xf3c   :  { %795 = vrot.lane.b32.xlu1 %v1461_v18, %s1582_s17 }
 0xf9e   :  { %v570_v19 = vpop.permute.xlu0 %569 }
 0xf9f   :  { %v572_v4 = vmul.f32 %v570_v19, %v553_v54 }
 0xfa1   :  { %v1738_v22 = vpack.c.bf16 %v572_v4, %v572_v4 }
 0xfa3   :  { %v579_v7 = vunpack.c.l.b16 %v1738_v22 }
 0xfa5   :  { %v580_v23 = vpack.c.b16 %v579_v7, %v579_v7 }
 0xfa7   :  { %581 = vrot.lane.b32.xlu2 %v580_v23, %s1579_s14 }
 0xfae   :  { %v796_v24 = vpop.permute.xlu1 %795 }
 0xfaf   :  { %v798_v25 = vmul.f32 %v796_v24, %v779_v6 }
 0xfb1   :  { %v799_v26 = vpack.c.bf16 %v798_v25, %v798_v25 }
 0xfb3   :  { %801 = vrot.lane.b32.xlu0 %v799_v26, %s1579_s14 }
0x1001   :  { %v582_v27 = vpop.permute.xlu2 %581 }
0x1002   :  { %1312 = vmatmul.msk.bf16.vlgmr.msra.gmra.mxu2 %vm80_vm0, %v582_v27 }
0x1003   :  { %986 = vmatpush.bf16.msra.mxu2 %v1706_v20 }
0x1007   :  { %987 = vmatpush.bf16.msra.mxu2 %v1709_v21 }
0x1025   :  { %v802_v28 = vpop.permute.xlu0 %801 }
0x1026   :  { %1351 = vmatmul.msk.bf16.vlgmr.msrb.gmra.mxu2 %vm80_vm0, %v802_v28 }
0x1027   :  { %1160 = vmatpush.bf16.msrb.mxu2 %v1706_v20 }
0x102b   :  { %1161 = vmatpush.bf16.msrb.mxu2 %v1709_v21 }
0x1085   :  { %v1749_v29 = vpop.f32.mrf.mxu2 }
0x108d   :  { %v597_v30 = vpop.f32.mrf.mxu2 }
0x10a9   :  { %v815_v33 = vpop.f32.mrf.mxu2 }
0x10aa   :  { %v819_v34 = vadd.f32 %v815_v33, %v719_v5 }
0x10ac   :  { %1462 = vtanh.f32 %v819_v34  ;;  %v1352_v39 = vmul.f32 -1.442695, %v819_v34 }
0x10ae   :  { %1464 = vpow2.f32 %v1352_v39 }
0x10b1   :  { %v817_v35 = vpop.f32.mrf.mxu2 }
0x10b2   :  { %v1463_v37 = vpop.eup %1462 }
0x10b3   :  { %842 = vrot.lane.b32.xlu1 %v1463_v37, %s1582_s17 }
0x10b4   :  { %v1465_v20 = vpop.eup %1464 }
0x10b5   :  { %v823_v21 = vadd.f32 1.0, %v1465_v20 }
0x10b7   :  { %1466 = vrcp.f32 %v823_v21  ;;  %v835_v46 = vand.u32 2147483648, %v823_v21  ;;  %vm829_vm5 = vweird.f32 %v823_v21  ;;  %v833_v47 = vand.u32 2147483647, %v823_v21 }
0x10b9   :  { %v836_v49 = vor.u32 1.1754944e-38, %v835_v46  ;;  %vm834_vm7 = vcmp.eq.f32.partialorder %v833_v47, 8.507059e+37 }
0x10bb   :  { %319 = vrot.lane.b32.xlu1 %v1657_v38, %s1579_s14 }
0x10bd   :  { %v1467_v40 = vpop.eup %1466 }
0x10be   :  { %v825_v41 = vmul.f32 %v1467_v40, %v823_v21  ;;  %vm830_vm4 = vweird.f32 %v1467_v40 }
0x10bf   :  { %vm831_vm6 = vmor %vm829_vm5, %vm830_vm4 }
0x10c0   :  { %v826_v43 = vsub.f32 1.0, %v825_v41 }
0x10c2   :  { %v827_v44 = vmul.f32 %v1467_v40, %v826_v43 }
0x10c4   :  { %v828_v45 = vadd.f32 %v1467_v40, %v827_v44 }
0x10c6   :  { %v832_v48 = vsel %vm831_vm6, %v1467_v40, %v828_v45 }
0x10c7   :  { %v837_v38 = vsel %vm834_vm7, %v836_v49, %v832_v48 }
0x10c8   :  { %v840_v53 = vmul.f32 %v837_v38, %v792_v17 }
0x1125   :  { %v843_v50 = vpop.permute.xlu1 %842 }
0x1126   :  { %v845_v51 = vmul.f32 %v843_v50, %v837_v38 }
0x1128   :  { %847 = vrot.lane.b32.xlu2 %v845_v51, %s1582_s17 }
0x112d   :  { %v320_v52 = vpop.permute.xlu1 %319 }
0x112e   :  { %322 = vst.msk [vmem:[#allocation2 + $0x8] sm:$0xf] %vm193_vm10, %v320_v52 }
0x1130   :  { %383 = vrot.lane.b32.xlu2 %v1670_v9, %s1579_s14  ;;  %v1764_v9 = vpop.f32.mrf.mxu0 }
0x1182   :  { %v848_v54 = vpop.permute.xlu2 %847 }
0x1183   :  { %v850_v55 = vadd.f32 %v848_v54, %v840_v53 }
0x1185   :  { %1468 = vtanh.f32 %v850_v55 }
0x118a   :  { %v384_v56 = vpop.permute.xlu2 %383 }
0x118b   :  { %v1469_v57 = vpop.eup %1468  ;;  %386 = vst.msk [vmem:[#allocation2 + $0xc] sm:$0xf] %vm193_vm10, %v384_v56 }
0x118c   :  { %853 = vrot.lane.b32.xlu0 %v1469_v57, %s1582_s17 }
0x1192   :  { %v1387_v58 = vld [vmem:[#allocation2 + $0x8] sm:$0xff] }
0x1193   :  { %1339 = vmatmul.msk.bf16.gmra.mxu3 %vm80_vm0, %v1387_v58 }
0x11fe   :  { %v854_v59 = vpop.permute.xlu0 %853 }
0x11ff   :  { %v856_v60 = vmul.f32 %v854_v59, %v837_v38 }
0x1201   :  { %v857_v61 = vpack.c.bf16 %v856_v60, %v856_v60 }
0x1203   :  { %859 = vrot.lane.b32.xlu0 %v857_v61, %s1579_s14 }
0x1216   :  { %v721_v63 = vpop.f32.mrf.mxu3 }
0x1217   :  { %v722_v0 = vadd.f32 %v721_v63, %v1726_v31 }
0x121e   :  { %v723_v37 = vpop.f32.mrf.mxu3 }
0x121f   :  { %v724_v39 = vadd.f32 %v723_v37, %v1726_v31 }
0x1275   :  { %v860_v62 = vpop.permute.xlu0 %859 }
0x1276   :  { %1353 = vmatmul.msk.bf16.vlgmr.msrb.gmra.mxu0 %vm80_vm0, %v860_v62 }
0x12f3   :  { %v873_v1 = vpop.f32.mrf.mxu0 }
0x12f4   :  { %v877_v2 = vadd.f32 %v873_v1, %v722_v0 }
0x12f6   :  { %1470 = vtanh.f32 %v877_v2  ;;  %v1354_v10 = vmul.f32 -1.442695, %v877_v2 }
0x12f8   :  { %1472 = vpow2.f32 %v1354_v10 }
0x12fb   :  { %v875_v3 = vpop.f32.mrf.mxu0 }
0x12fc   :  { %v1471_v6 = vpop.eup %1470 }
0x12fd   :  { %900 = vrot.lane.b32.xlu1 %v1471_v6, %s1582_s17 }
0x12fe   :  { %v1473_v11 = vpop.eup %1472 }
0x12ff   :  { %v881_v12 = vadd.f32 1.0, %v1473_v11 }
0x1301   :  { %1474 = vrcp.f32 %v881_v12  ;;  %v893_v19 = vand.u32 2147483648, %v881_v12  ;;  %vm887_vm9 = vweird.f32 %v881_v12  ;;  %v891_v4 = vand.u32 2147483647, %v881_v12 }
0x1303   :  { %v894_v23 = vor.u32 1.1754944e-38, %v893_v19  ;;  %vm892_vm12 = vcmp.eq.f32.partialorder %v891_v4, 8.507059e+37 }
0x1307   :  { %v1475_v36 = vpop.eup %1474 }
0x1308   :  { %v883_v14 = vmul.f32 %v1475_v36, %v881_v12  ;;  %vm888_vm8 = vweird.f32 %v1475_v36 }
0x1309   :  { %vm889_vm11 = vmor %vm887_vm9, %vm888_vm8 }
0x130a   :  { %v884_v15 = vsub.f32 1.0, %v883_v14 }
0x130c   :  { %v885_v17 = vmul.f32 %v1475_v36, %v884_v15 }
0x130e   :  { %v886_v18 = vadd.f32 %v1475_v36, %v885_v17 }
0x1310   :  { %v890_v7 = vsel %vm889_vm11, %v1475_v36, %v886_v18 }
0x1311   :  { %v895_v25 = vsel %vm892_vm12, %v894_v23, %v890_v7 }
0x1312   :  { %v898_v27 = vmul.f32 %v895_v25, %v850_v55 }
0x136f   :  { %v901_v24 = vpop.permute.xlu1 %900 }
0x1370   :  { %v903_v26 = vmul.f32 %v901_v24, %v895_v25 }
0x1372   :  { %905 = vrot.lane.b32.xlu2 %v903_v26, %s1582_s17  ;;  %v120_v26 = vadd.f32 %v1764_v9, %v1627_v8 }
0x13cc   :  { %v906_v28 = vpop.permute.xlu2 %905 }
0x13cd   :  { %v908_v30 = vadd.f32 %v906_v28, %v898_v27  ;;  %v599_v28 = vadd.f32 %v1749_v29, %v120_v26 }
0x13cf   :  { %1476 = vtanh.f32 %v908_v30  ;;  %v1313_v9 = vmul.f32 -1.442695, %v599_v28 }
0x13d5   :  { %v1477_v32 = vpop.eup %1476 }
0x13d6   :  { %911 = vrot.lane.b32.xlu0 %v1477_v32, %s1582_s17 }
0x1448   :  { %v912_v5 = vpop.permute.xlu0 %911 }
0x1449   :  { %v914_v33 = vmul.f32 %v912_v5, %v895_v25 }
0x144b   :  { %v915_v34 = vpack.c.bf16 %v914_v33, %v914_v33 }
0x144d   :  { %917 = vrot.lane.b32.xlu1 %v915_v34, %s1579_s14 }
0x14bf   :  { %v918_v35 = vpop.permute.xlu1 %917 }
0x14c0   :  { %1355 = vmatmul.msk.bf16.vlgmr.msra.gmra.mxu1 %vm80_vm0, %v918_v35 }
0x153d   :  { %v931_v20 = vpop.f32.mrf.mxu1 }
0x153e   :  { %v935_v21 = vadd.f32 %v931_v20, %v724_v39 }
0x1540   :  { %1478 = vtanh.f32 %v935_v21  ;;  %v1356_v43 = vmul.f32 -1.442695, %v935_v21 }
0x1542   :  { %1480 = vpow2.f32 %v1356_v43 }
0x1545   :  { %v933_v40 = vpop.f32.mrf.mxu1 }
0x1546   :  { %v1479_v41 = vpop.eup %1478 }
0x1547   :  { %958 = vrot.lane.b32.xlu2 %v1479_v41, %s1582_s17 }
0x1548   :  { %v1481_v44 = vpop.eup %1480 }
0x1549   :  { %v939_v45 = vadd.f32 1.0, %v1481_v44 }
0x154b   :  { %1482 = vrcp.f32 %v939_v45  ;;  %v951_v38 = vand.u32 2147483648, %v939_v45  ;;  %vm945_vm14 = vweird.f32 %v939_v45  ;;  %v949_v51 = vand.u32 2147483647, %v939_v45 }
0x154d   :  { %v952_v53 = vor.u32 1.1754944e-38, %v951_v38  ;;  %vm950_vm1 = vcmp.eq.f32.partialorder %v949_v51, 8.507059e+37 }
0x154f   :  { %447 = vrot.lane.b32.xlu2 %v1679_v42, %s1579_s14 }
0x1551   :  { %v1483_v46 = vpop.eup %1482 }
0x1552   :  { %v941_v47 = vmul.f32 %v1483_v46, %v939_v45  ;;  %vm946_vm13 = vweird.f32 %v1483_v46 }
0x1553   :  { %vm947_vm15 = vmor %vm945_vm14, %vm946_vm13 }
0x1554   :  { %v942_v48 = vsub.f32 1.0, %v941_v47 }
0x1556   :  { %v943_v49 = vmul.f32 %v1483_v46, %v942_v48 }
0x1558   :  { %v944_v50 = vadd.f32 %v1483_v46, %v943_v49 }
0x155a   :  { %v948_v52 = vsel %vm947_vm15, %v1483_v46, %v944_v50 }
0x155b   :  { %v953_v42 = vsel %vm950_vm1, %v952_v53, %v948_v52 }
0x155c   :  { %v956_v57 = vmul.f32 %v953_v42, %v908_v30 }
0x15a1   :  { %v959_v54 = vpop.permute.xlu2 %958 }
0x15a2   :  { %v961_v55 = vmul.f32 %v959_v54, %v953_v42 }
0x15a4   :  { %963 = vrot.lane.b32.xlu0 %v961_v55, %s1582_s17 }
0x15a9   :  { %v448_v56 = vpop.permute.xlu2 %447 }
0x15aa   :  { %450 = vst.msk [vmem:[#allocation2 + $0x10] sm:$0xf] %vm193_vm10, %v448_v56 }
0x15ac   :  { %511 = vrot.lane.b32.xlu0 %v1700_v16, %s1579_s14 }
0x1616   :  { %v964_v58 = vpop.permute.xlu0 %963 }
0x1617   :  { %v966_v59 = vadd.f32 %v964_v58, %v956_v57 }
0x1619   :  { %1484 = vtanh.f32 %v966_v59 }
0x161e   :  { %v512_v60 = vpop.permute.xlu0 %511 }
0x161f   :  { %v1485_v61 = vpop.eup %1484  ;;  %514 = vst.msk [vmem:[#allocation2 + $0x14] sm:$0xf] %vm193_vm10, %v512_v60 }
0x1620   :  { %969 = vrot.lane.b32.xlu1 %v1485_v61, %s1582_s17 }
0x1626   :  { %v1388_v62 = vld [vmem:[#allocation2 + $0x10] sm:$0xff] }
0x1627   :  { %1340 = vmatmul.msk.bf16.gmra.mxu3 %vm80_vm0, %v1388_v62 }
0x1692   :  { %v970_v63 = vpop.permute.xlu1 %969 }
0x1693   :  { %v972_v0 = vmul.f32 %v970_v63, %v953_v42 }
0x1695   :  { %v973_v1 = vpack.c.bf16 %v972_v0, %v972_v0 }
0x1697   :  { %975 = vrot.lane.b32.xlu1 %v973_v1, %s1579_s14 }
0x16aa   :  { %v726_v16 = vpop.f32.mrf.mxu3 }
0x16ab   :  { %v727_v3 = vadd.f32 %v726_v16, %v1726_v31 }
0x16b2   :  { %v728_v54 = vpop.f32.mrf.mxu3 }
0x16b3   :  { %v729_v42 = vadd.f32 %v728_v54, %v1726_v31 }
0x1709   :  { %v976_v2 = vpop.permute.xlu1 %975 }
0x170a   :  { %1357 = vmatmul.msk.bf16.vlgmr.msra.gmra.mxu2 %vm80_vm0, %v976_v2 }
0x178d   :  { %v989_v6 = vpop.f32.mrf.mxu2 }
0x178e   :  { %v993_v10 = vadd.f32 %v989_v6, %v727_v3 }
0x1790   :  { %1486 = vtanh.f32 %v993_v10  ;;  %v1358_v36 = vmul.f32 -1.442695, %v993_v10 }
0x1792   :  { %1488 = vpow2.f32 %v1358_v36 }
0x1795   :  { %v991_v11 = vpop.f32.mrf.mxu2 }
0x1796   :  { %v1487_v12 = vpop.eup %1486 }
0x1797   :  { %1016 = vrot.lane.b32.xlu2 %v1487_v12, %s1582_s17 }
0x1798   :  { %v1489_v14 = vpop.eup %1488 }
0x1799   :  { %v997_v15 = vadd.f32 1.0, %v1489_v14 }
0x179b   :  { %1490 = vrcp.f32 %v997_v15  ;;  %v1009_v23 = vand.u32 2147483648, %v997_v15  ;;  %vm1003_vm3 = vweird.f32 %v997_v15  ;;  %v1007_v24 = vand.u32 2147483647, %v997_v15 }
0x179c   :  { %1492 = vtanh.f32 %v599_v28 }
0x179d   :  { %v1010_v27 = vor.u32 1.1754944e-38, %v1009_v23  ;;  %vm1008_vm5 = vcmp.eq.f32.partialorder %v1007_v24, 8.507059e+37 }
0x17a1   :  { %v1491_v17 = vpop.eup %1490 }
0x17a2   :  { %v999_v18 = vmul.f32 %v1491_v17, %v997_v15  ;;  %vm1004_vm2 = vweird.f32 %v1491_v17  ;;  %v1493_v33 = vpop.eup %1492 }
0x17a3   :  { %vm1005_vm4 = vmor %vm1003_vm3, %vm1004_vm2 }
0x17a4   :  { %v1000_v19 = vsub.f32 1.0, %v999_v18 }
0x17a6   :  { %v1001_v4 = vmul.f32 %v1491_v17, %v1000_v19 }
0x17a8   :  { %v1002_v7 = vadd.f32 %v1491_v17, %v1001_v4 }
0x17aa   :  { %v1006_v25 = vsel %vm1005_vm4, %v1491_v17, %v1002_v7 }
0x17ab   :  { %v1011_v32 = vsel %vm1008_vm5, %v1010_v27, %v1006_v25 }
0x17ac   :  { %v1014_v34 = vmul.f32 %v1011_v32, %v966_v59 }
0x17f1   :  { %v1017_v30 = vpop.permute.xlu2 %1016 }
0x17f2   :  { %v1019_v5 = vmul.f32 %v1017_v30, %v1011_v32 }
0x17f4   :  { %1021 = vrot.lane.b32.xlu0 %v1019_v5, %s1582_s17 }
0x17fc   :  { %622 = vrot.lane.b32.xlu0 %v1493_v33, %s1582_s17 }
0x1866   :  { %v1022_v35 = vpop.permute.xlu0 %1021 }
0x1867   :  { %v1792_v37 = vadd.f32 %v1022_v35, %v1014_v34 }
0x1869   :  { %1494 = vtanh.f32 %v1792_v37 }
0x186a   :  { %1496 = vpow2.f32 %v1313_v9 }
0x186e   :  { %v623_v38 = vpop.permute.xlu0 %622 }
0x186f   :  { %v1495_v8 = vpop.eup %1494 }
0x1870   :  { %1027 = vrot.lane.b32.xlu1 %v1495_v8, %s1582_s17  ;;  %v1497_v29 = vpop.eup %1496 }
0x1871   :  { %v603_v39 = vadd.f32 1.0, %v1497_v29 }
0x1873   :  { %1498 = vrcp.f32 %v603_v39  ;;  %v615_v47 = vand.u32 2147483648, %v603_v39  ;;  %vm609_vm7 = vweird.f32 %v603_v39  ;;  %v613_v48 = vand.u32 2147483647, %v603_v39 }
0x1875   :  { %v616_v50 = vor.u32 1.1754944e-38, %v615_v47  ;;  %vm614_vm9 = vcmp.eq.f32.partialorder %v613_v48, 8.507059e+37 }
0x1879   :  { %v1499_v20 = vpop.eup %1498 }
0x187a   :  { %v605_v21 = vmul.f32 %v1499_v20, %v603_v39  ;;  %vm610_vm6 = vweird.f32 %v1499_v20 }
0x187b   :  { %vm611_vm8 = vmor %vm609_vm7, %vm610_vm6 }
0x187c   :  { %v606_v40 = vsub.f32 1.0, %v605_v21 }
0x187e   :  { %v607_v41 = vmul.f32 %v1499_v20, %v606_v40 }
0x1880   :  { %v608_v45 = vadd.f32 %v1499_v20, %v607_v41 }
0x1882   :  { %v612_v49 = vsel %vm611_vm8, %v1499_v20, %v608_v45 }
0x1883   :  { %v617_v51 = vsel %vm614_vm9, %v616_v50, %v612_v49 }
0x1884   :  { %v625_v52 = vmul.f32 %v623_v38, %v617_v51  ;;  %v620_v58 = vmul.f32 %v617_v51, %v1733_v13 }
0x18e2   :  { %v1028_v43 = vpop.permute.xlu1 %1027 }
0x18e3   :  { %v1030_v44 = vmul.f32 %v1028_v43, %v1011_v32 }
0x18e5   :  { %v1031_v46 = vpack.c.bf16 %v1030_v44, %v1030_v44 }
0x18e7   :  { %1033 = vrot.lane.b32.xlu2 %v1031_v46, %s1579_s14 }
0x18ef   :  { %627 = vrot.lane.b32.xlu2 %v625_v52, %s1582_s17 }
0x1941   :  { %v1034_v53 = vpop.permute.xlu2 %1033 }
0x1942   :  { %1359 = vmatmul.msk.bf16.vlgmr.msra.gmra.mxu0 %vm80_vm0, %v1034_v53 }
0x1949   :  { %v628_v57 = vpop.permute.xlu2 %627 }
0x194a   :  { %v630_v59 = vadd.f32 %v628_v57, %v620_v58 }
0x19bf   :  { %v1047_v55 = vpop.f32.mrf.mxu0 }
0x19c0   :  { %v1051_v56 = vadd.f32 %v1047_v55, %v729_v42 }
0x19c2   :  { %1500 = vtanh.f32 %v1051_v56  ;;  %v1360_v63 = vmul.f32 -1.442695, %v1051_v56 }
0x19c3   :  { %1502 = vtanh.f32 %v630_v59 }
0x19c4   :  { %1504 = vpow2.f32 %v1360_v63 }
0x19c7   :  { %v1049_v60 = vpop.f32.mrf.mxu0 }
0x19c8   :  { %v1501_v61 = vpop.eup %1500 }
0x19c9   :  { %1074 = vrot.lane.b32.xlu1 %v1501_v61, %s1582_s17  ;;  %v1503_v62 = vpop.eup %1502 }
0x19ca   :  { %v1505_v0 = vpop.eup %1504 }
0x19cb   :  { %v1055_v1 = vadd.f32 1.0, %v1505_v0 }
0x19cd   :  { %1506 = vrcp.f32 %v1055_v1  ;;  %v1067_v13 = vand.u32 2147483648, %v1055_v1  ;;  %vm1061_vm12 = vweird.f32 %v1055_v1  ;;  %v1065_v11 = vand.u32 2147483647, %v1055_v1 }
0x19cf   :  { %v1068_v36 = vor.u32 1.1754944e-38, %v1067_v13  ;;  %vm1066_vm14 = vcmp.eq.f32.partialorder %v1065_v11, 8.507059e+37 }
0x19d1   :  { %633 = vrot.lane.b32.xlu1 %v1503_v62, %s1582_s17 }
0x19d3   :  { %v1507_v2 = vpop.eup %1506 }
0x19d4   :  { %v1057_v16 = vmul.f32 %v1507_v2, %v1055_v1  ;;  %vm1062_vm11 = vweird.f32 %v1507_v2 }
0x19d5   :  { %vm1063_vm13 = vmor %vm1061_vm12, %vm1062_vm11 }
0x19d6   :  { %v1058_v3 = vsub.f32 1.0, %v1057_v16 }
0x19d8   :  { %v1059_v6 = vmul.f32 %v1507_v2, %v1058_v3 }
0x19da   :  { %v1060_v10 = vadd.f32 %v1507_v2, %v1059_v6 }
0x19dc   :  { %v1064_v12 = vsel %vm1063_vm13, %v1507_v2, %v1060_v10 }
0x19dd   :  { %v1069_v15 = vsel %vm1066_vm14, %v1068_v36, %v1064_v12 }
0x19de   :  { %v1072_v7 = vmul.f32 %v1069_v15, %v1792_v37 }
0x1a3b   :  { %v1075_v14 = vpop.permute.xlu1 %1074 }
0x1a3c   :  { %v1077_v17 = vmul.f32 %v1075_v14, %v1069_v15 }
0x1a3e   :  { %1079 = vrot.lane.b32.xlu0 %v1077_v17, %s1582_s17 }
0x1a43   :  { %v634_v18 = vpop.permute.xlu1 %633 }
0x1a44   :  { %v636_v19 = vmul.f32 %v634_v18, %v617_v51 }
0x1a46   :  { %v637_v4 = vpack.c.bf16 %v636_v19, %v636_v19  ;;  %575 = vrot.lane.b32.xlu0 %v1738_v22, %s1579_s14 }
0x1a48   :  { %639 = vrot.lane.b32.xlu1 %v637_v4, %s1579_s14 }
0x1ab0   :  { %v1080_v23 = vpop.permute.xlu0 %1079 }
0x1ab1   :  { %v1082_v24 = vadd.f32 %v1080_v23, %v1072_v7  ;;  %v1391_v23 = vld [vmem:[#allocation3 + $0x50] sm:$0xff] }
0x1ab2   :  { %1238 = vmatpush.bf16.msrb.mxu0 %v1391_v23 }
0x1ab3   :  { %1508 = vtanh.f32 %v1082_v24 }
0x1ab8   :  { %v576_v25 = vpop.permute.xlu0 %575 }
0x1ab9   :  { %v1509_v26 = vpop.eup %1508  ;;  %578 = vst.msk [vmem:[#allocation2 + $0x18] sm:$0xf] %vm193_vm10, %v576_v25 }
0x1aba   :  { %1085 = vrot.lane.b32.xlu2 %v1509_v26, %s1582_s17  ;;  %v640_v27 = vpop.permute.xlu1 %639 }
0x1abb   :  { %642 = vst.msk [vmem:[#allocation2 + $0x1c] sm:$0xf] %vm193_vm10, %v640_v27 }
0x1ac2   :  { %v1389_v28 = vld [vmem:[#allocation2 + $0x18] sm:$0xff] }
0x1ac3   :  { %1341 = vmatmul.msk.bf16.gmra.mxu3 %vm80_vm0, %v1389_v28 }
0x1b14   :  { %v1086_v22 = vpop.permute.xlu2 %1085 }
0x1b15   :  { %v1088_v30 = vmul.f32 %v1086_v22, %v1069_v15  ;;  %v1210_v22 = vld [vmem:[#allocation3 + $0x58] sm:$0x1] }
0x1b17   :  { %v1089_v32 = vpack.c.bf16 %v1088_v30, %v1088_v30  ;;  %v1211_v30 = vunpack.c.l.bf16 %v1210_v22 }
0x1b19   :  { %1091 = vrot.lane.b32.xlu2 %v1089_v32, %s1579_s14  ;;  %v1213_v32 = vperm.slane %v1211_v30, 0 }
0x1b46   :  { %v731_v33 = vpop.f32.mrf.mxu3 }
0x1b47   :  { %v732_v34 = vadd.f32 %v731_v33, %v1726_v31 }
0x1b4e   :  { %v733_v58 = vpop.f32.mrf.mxu3 }
0x1b4f   :  { %v734_v59 = vadd.f32 %v733_v58, %v1726_v31 }
0x1b73   :  { %v1092_v5 = vpop.permute.xlu2 %1091 }
0x1b74   :  { %1361 = vmatmul.msk.bf16.vlgmr.msrb.gmra.mxu1 %vm80_vm0, %v1092_v5 }
0x1bf1   :  { %v1105_v35 = vpop.f32.mrf.mxu1 }
0x1bf2   :  { %v1109_v37 = vadd.f32 %v1105_v35, %v732_v34 }
0x1bf4   :  { %1510 = vtanh.f32 %v1109_v37  ;;  %v1362_v29 = vmul.f32 -1.442695, %v1109_v37 }
0x1bf6   :  { %1512 = vpow2.f32 %v1362_v29 }
0x1bf9   :  { %v1107_v8 = vpop.f32.mrf.mxu1 }
0x1bfa   :  { %v1511_v9 = vpop.eup %1510 }
0x1bfb   :  { %1132 = vrot.lane.b32.xlu0 %v1511_v9, %s1582_s17 }
0x1bfc   :  { %v1513_v39 = vpop.eup %1512 }
0x1bfd   :  { %v1113_v20 = vadd.f32 1.0, %v1513_v39 }
0x1bff   :  { %1514 = vrcp.f32 %v1113_v20  ;;  %v1125_v45 = vand.u32 2147483648, %v1113_v20  ;;  %vm1119_vm15 = vweird.f32 %v1113_v20  ;;  %v1123_v46 = vand.u32 2147483647, %v1113_v20 }
0x1c01   :  { %v1126_v48 = vor.u32 1.1754944e-38, %v1125_v45  ;;  %vm1124_vm2 = vcmp.eq.f32.partialorder %v1123_v46, 8.507059e+37 }
0x1c05   :  { %v1515_v21 = vpop.eup %1514 }
0x1c06   :  { %v1115_v40 = vmul.f32 %v1515_v21, %v1113_v20  ;;  %vm1120_vm10 = vweird.f32 %v1515_v21 }
0x1c07   :  { %vm1121_vm1 = vmor %vm1119_vm15, %vm1120_vm10 }
0x1c08   :  { %v1116_v41 = vsub.f32 1.0, %v1115_v40 }
0x1c0a   :  { %v1117_v43 = vmul.f32 %v1515_v21, %v1116_v41 }
0x1c0c   :  { %v1118_v44 = vadd.f32 %v1515_v21, %v1117_v43 }
0x1c0e   :  { %v1122_v47 = vsel %vm1121_vm1, %v1515_v21, %v1118_v44 }
0x1c0f   :  { %v1127_v50 = vsel %vm1124_vm2, %v1126_v48, %v1122_v47 }
0x1c10   :  { %v1130_v51 = vmul.f32 %v1127_v50, %v1082_v24  ;;  %v1390_v24 = vld [vmem:[#allocation3 + $0x48] sm:$0xff] }
0x1c11   :  { %1239 = vmatpush.bf16.msrb.mxu0 %v1390_v24 }
0x1c6d   :  { %v1133_v49 = vpop.permute.xlu0 %1132 }
0x1c6e   :  { %v1135_v38 = vmul.f32 %v1133_v49, %v1127_v50 }
0x1c70   :  { %1137 = vrot.lane.b32.xlu1 %v1135_v38, %s1582_s17 }
0x1ce2   :  { %v1138_v52 = vpop.permute.xlu1 %1137 }
0x1ce3   :  { %v1140_v53 = vadd.f32 %v1138_v52, %v1130_v51 }
0x1ce5   :  { %1516 = vtanh.f32 %v1140_v53 }
0x1ceb   :  { %v1517_v54 = vpop.eup %1516 }
0x1cec   :  { %1143 = vrot.lane.b32.xlu2 %v1517_v54, %s1582_s17 }
0x1d46   :  { %v1144_v42 = vpop.permute.xlu2 %1143 }
0x1d47   :  { %v1146_v55 = vmul.f32 %v1144_v42, %v1127_v50 }
0x1d49   :  { %v1147_v56 = vpack.c.bf16 %v1146_v55, %v1146_v55 }
0x1d4b   :  { %1149 = vrot.lane.b32.xlu0 %v1147_v56, %s1579_s14 }
0x1dbd   :  { %v1150_v57 = vpop.permute.xlu0 %1149 }
0x1dbe   :  { %1363 = vmatmul.msk.bf16.vlgmr.msrb.gmra.mxu2 %vm80_vm0, %v1150_v57 }
0x1e41   :  { %v1163_v60 = vpop.f32.mrf.mxu2 }
0x1e42   :  { %v1167_v61 = vadd.f32 %v1163_v60, %v734_v59 }
0x1e44   :  { %1518 = vtanh.f32 %v1167_v61  ;;  %v1364_v0 = vmul.f32 -1.442695, %v1167_v61 }
0x1e46   :  { %1520 = vpow2.f32 %v1364_v0 }
0x1e49   :  { %v1165_v62 = vpop.f32.mrf.mxu2 }
0x1e4a   :  { %v1519_v63 = vpop.eup %1518 }
0x1e4b   :  { %1190 = vrot.lane.b32.xlu1 %v1519_v63, %s1582_s17 }
0x1e4c   :  { %v1521_v1 = vpop.eup %1520 }
0x1e4d   :  { %v1171_v2 = vadd.f32 1.0, %v1521_v1 }
0x1e4f   :  { %1522 = vrcp.f32 %v1171_v2  ;;  %v1183_v11 = vand.u32 2147483648, %v1171_v2  ;;  %vm1177_vm4 = vweird.f32 %v1171_v2  ;;  %v1181_v31 = vand.u32 2147483647, %v1171_v2 }
0x1e51   :  { %v1184_v36 = vor.u32 1.1754944e-38, %v1183_v11  ;;  %vm1182_vm6 = vcmp.eq.f32.partialorder %v1181_v31, 8.507059e+37 }
0x1e55   :  { %v1523_v16 = vpop.eup %1522 }
0x1e56   :  { %v1173_v3 = vmul.f32 %v1523_v16, %v1171_v2  ;;  %vm1178_vm3 = vweird.f32 %v1523_v16 }
0x1e57   :  { %vm1179_vm5 = vmor %vm1177_vm4, %vm1178_vm3 }
0x1e58   :  { %v1174_v6 = vsub.f32 1.0, %v1173_v3 }
0x1e5a   :  { %v1175_v10 = vmul.f32 %v1523_v16, %v1174_v6 }
0x1e5c   :  { %v1176_v13 = vadd.f32 %v1523_v16, %v1175_v10 }
0x1e5e   :  { %v1180_v12 = vsel %vm1179_vm5, %v1523_v16, %v1176_v13 }
0x1e5f   :  { %v1185_v15 = vsel %vm1182_vm6, %v1184_v36, %v1180_v12 }
0x1e60   :  { %v1188_v18 = vmul.f32 %v1185_v15, %v1140_v53 }
0x1ebd   :  { %v1191_v14 = vpop.permute.xlu1 %1190 }
0x1ebe   :  { %v1193_v17 = vmul.f32 %v1191_v14, %v1185_v15 }
0x1ec0   :  { %1195 = vrot.lane.b32.xlu2 %v1193_v17, %s1582_s17 }
0x1f1a   :  { %v1196_v19 = vpop.permute.xlu2 %1195 }
0x1f1b   :  { %v1198_v4 = vadd.f32 %v1196_v19, %v1188_v18 }
0x1f1d   :  { %1524 = vtanh.f32 %v1198_v4 }
0x1f23   :  { %v1525_v7 = vpop.eup %1524 }
0x1f24   :  { %1201 = vrot.lane.b32.xlu0 %v1525_v7, %s1582_s17 }
0x1f96   :  { %v1202_v25 = vpop.permute.xlu0 %1201 }
0x1f97   :  { %v1204_v26 = vmul.f32 %v1202_v25, %v1185_v15 }
0x1f99   :  { %v1212_v27 = vpack.c.bf16 %v1204_v26, %v1204_v26 }
0x1f9b   :  { %1215 = vrot.lane.b32.xlu1 %v1212_v27, %s1579_s14 }
0x200d   :  { %v1216_v28 = vpop.permute.xlu1 %1215 }
0x200e   :  { %1373 = vmatmul.msk.bf16.vlgmr.msrb.gmra.mxu0 %vm80_vm0, %v1216_v28 }
0x208b   :  { %v1241_v5 = vpop.f32.mrf.mxu0 }
0x208c   :  { %v1242_v33 = vadd.f32 %v1241_v5, %v1213_v32 }
0x208e   :  { %1245 = vst [vmem:[#allocation6] sm:$0xff] %v1242_v33 }
0x208f   :  { %1256 = dma.vmem_to_hbm [thread:$0]  %s1252_s24, 128, %s1254_s27, [#allocation5]  }
0x2093   :  { %v1243_v34 = vpop.f32.mrf.mxu0 }
0x2094   :  { %1576 = dma.done.wait [#allocation5], 128  }
0x2095   :  { %1577 = vsyncadd [#allocation5], 4294967168 }
0x2096   :  { %1261 = vsyncpa [#allocation4], 1 }
0x2097   :  { %1262 = vsyncpa [#allocation5], 1 }

</bundles_post_ra>
